<compile_context>
chip_gen: v6e
topology: v6e:2x2x1
jax: 0.10.0
libtpu: 0.0.40
codegen_flags: <defaults>
</compile_context>

<pallas_src>
import functools

import jax
import jax.numpy as jnp
from jax import lax
from jax.experimental import pallas as pl
from jax.experimental.pallas import tpu as pltpu


def _round_up(x, m):
    return (x + m - 1) // m * m


def _cmc_loss_kernel(m1_ref, m2_ref, t_ref, c_ref, out_ref,
                     s1_ref, s2_ref, cnt_ref, *, inv_bd):
    """Grid step = one batch tile; accumulate per-class sums and counts."""
    j = pl.program_id(0)
    nj = pl.num_programs(0)

    @pl.when(j == 0)
    def _init():
        s1_ref[...] = jnp.zeros_like(s1_ref)
        s2_ref[...] = jnp.zeros_like(s2_ref)
        cnt_ref[...] = jnp.zeros_like(cnt_ref)

    tb = m1_ref.shape[0]
    c_pad = s1_ref.shape[0]

    t = t_ref[...]                                             # (TB, 1) int32
    classes = lax.broadcasted_iota(jnp.int32, (tb, c_pad), 1)  # lanes = classes
    onehot = (t == classes).astype(jnp.float32)                # (TB, C_pad)

    m1 = m1_ref[...].astype(jnp.float32)                       # (TB, D)
    m2 = m2_ref[...].astype(jnp.float32)

    # Per-class sums: onehot^T @ modal_tile (contraction over the TB rows, MXU).
    dn = (((0,), (0,)), ((), ()))
    s1_ref[...] += lax.dot_general(onehot, m1, dn,
                                   preferred_element_type=jnp.float32)
    s2_ref[...] += lax.dot_general(onehot, m2, dn,
                                   preferred_element_type=jnp.float32)
    # Per-class counts, also via the MXU so they land directly in (C_pad, 1)
    # layout (no sublane->lane transpose needed later).
    ones = jnp.ones((tb, 1), dtype=jnp.float32)
    cnt_ref[...] += lax.dot_general(onehot, ones, dn,
                                    preferred_element_type=jnp.float32)

    @pl.when(j == nj - 1)
    def _finalize():
        cnt = cnt_ref[...]                                     # (C_pad, 1)
        inv_cnt = 1.0 / jnp.maximum(cnt, 1.0)                  # safe for empty classes
        mean1 = s1_ref[...] * inv_cnt                          # (C_pad, D)
        mean2 = s2_ref[...] * inv_cnt
        cen = c_ref[...].astype(jnp.float32)                   # (C_pad, D)

        d1 = mean1 - cen
        d2 = mean2 - cen
        d3 = mean1 - mean2
        # sum_i f(targets[i]) == sum_c count[c] * f(c)  (exact reweighting).
        l1 = jnp.sum(cnt * (d1 * d1)) * inv_bd
        l2 = jnp.sum(cnt * (d2 * d2)) * inv_bd
        l3 = jnp.sum(cnt * (d3 * d3)) * inv_bd

        lane = lax.broadcasted_iota(jnp.int32, (1, 128), 1)
        vals = jnp.where(lane == 0, l1,
               jnp.where(lane == 1, l2,
               jnp.where(lane == 2, l3, 0.0)))
        out_ref[...] = vals                                    # lane-dense (1,128) store


def cross_modal_center_contrastive_loss5(modal1_inputs, modal2_inputs, targets,
                                         centers, *, block_b=128):
    """Returns (loss1 + loss2, loss3, 0.0) exactly like the PyTorch module."""
    B, D = modal1_inputs.shape
    C, Dc = centers.shape
    assert D == Dc, "feature dims must match"

    # Batch tiling; pad with label -1 rows (match no class -> contribute 0).
    tb = int(min(block_b, _round_up(B, 8)))
    tb = _round_up(tb, 8)
    b_pad = _round_up(B, tb)
    c_pad = _round_up(C, 128)

    targets = targets.astype(jnp.int32)
    if b_pad != B:
        pad = b_pad - B
        modal1_inputs = jnp.pad(modal1_inputs, ((0, pad), (0, 0)))
        modal2_inputs = jnp.pad(modal2_inputs, ((0, pad), (0, 0)))
        targets = jnp.pad(targets, ((0, pad),), constant_values=-1)
    if c_pad != C:
        centers = jnp.pad(centers, ((0, c_pad - C), (0, 0)))
    t_col = targets.reshape(b_pad, 1)

    grid = (b_pad // tb,)
    kernel = functools.partial(_cmc_loss_kernel, inv_bd=1.0 / float(B * D))

    flops = 2 * (2 * b_pad * c_pad * D) + 2 * b_pad * c_pad + 10 * c_pad * D
    bytes_accessed = 4 * (2 * b_pad * D + c_pad * D + b_pad + 128)
    cost = pl.CostEstimate(flops=int(flops), transcendentals=0,
                           bytes_accessed=int(bytes_accessed))

    out = pl.pallas_call(
        kernel,
        out_shape=jax.ShapeDtypeStruct((1, 128), jnp.float32),
        grid_spec=pltpu.PrefetchScalarGridSpec(
            num_scalar_prefetch=0,
            grid=grid,
            in_specs=[
                pl.BlockSpec((tb, D), lambda j: (j, 0)),       # modal1 tile
                pl.BlockSpec((tb, D), lambda j: (j, 0)),       # modal2 tile
                pl.BlockSpec((tb, 1), lambda j: (j, 0)),       # labels tile
                pl.BlockSpec((c_pad, D), lambda j: (0, 0)),    # centers (resident)
            ],
            out_specs=pl.BlockSpec((1, 128), lambda j: (0, 0)),
            scratch_shapes=[
                pltpu.VMEM((c_pad, D), jnp.float32),           # per-class sums (modal1)
                pltpu.VMEM((c_pad, D), jnp.float32),           # per-class sums (modal2)
                pltpu.VMEM((c_pad, 1), jnp.float32),           # per-class counts
            ],
        ),
        compiler_params=pltpu.CompilerParams(
            dimension_semantics=("arbitrary",),                # reduction over batch tiles
            vmem_limit_bytes=32 * 1024 * 1024,                 # safe on v5e/v6e/v7x
        ),
        cost_estimate=cost,
    )(modal1_inputs, modal2_inputs, t_col, centers)

    loss12 = out[0, 0] + out[0, 1]
    loss3 = out[0, 2]
    # Third return value of the PyTorch module is the literal constant 0.
    return loss12, loss3, 0.0


def _reference(modal1, modal2, targets, centers):
    """Exact (no-matmul) JAX transcription of the PyTorch forward."""
    eq = (targets[:, None] == targets[None, :]).astype(jnp.float32)   # (B, B)
    cnt = eq.sum(axis=1, keepdims=True)
    centersR = (eq[:, :, None] * modal1[None, :, :]).sum(axis=1) / cnt
    centersT = (eq[:, :, None] * modal2[None, :, :]).sum(axis=1) / cnt
    c_sel = centers[targets]
    loss1 = jnp.mean((centersR - c_sel) ** 2)
    loss2 = jnp.mean((centersT - c_sel) ** 2)
    loss3 = jnp.mean((centersR - centersT) ** 2)
    return loss1 + loss2, loss3


if __name__ == "__main__":
    # Small shapes consistent with the module (defaults: num_classes=395,
    # feat_dim=512): two modality feature batches + integer labels.
    batch, feat_dim, num_classes = 16, 256, 20

    key = jax.random.PRNGKey(0)
    k1, k2, k3, k4 = jax.random.split(key, 4)
    modal1 = jax.random.normal(k1, (batch, feat_dim), dtype=jnp.float32)
    modal2 = jax.random.normal(k2, (batch, feat_dim), dtype=jnp.float32)
    labels = jax.random.randint(k3, (batch,), 0, num_classes, dtype=jnp.int32)
    # Stand-in for nn.Parameter(torch.rand(num_classes, feat_dim)).
    centers = jax.random.uniform(k4, (num_classes, feat_dim), dtype=jnp.float32)

    # block_b=8 -> a 2-step grid at this toy size, exercising the accumulator.
    loss12, loss3, zero = cross_modal_center_contrastive_loss5(
        modal1, modal2, labels, centers, block_b=8)
    jax.block_until_ready((loss12, loss3))

    ref12, ref3 = _reference(modal1, modal2, labels, centers)
    assert jnp.allclose(loss12, ref12, rtol=1e-4, atol=1e-4), (loss12, ref12)
    assert jnp.allclose(loss3, ref3, rtol=1e-4, atol=1e-4), (loss3, ref3)
    assert zero == 0.0

    print("KERNEL_OK")
</pallas_src>

<mosaic_0001>
module attributes {stable_mosaic.version = 11 : i64} {
  func.func @_cmc_loss_kernel(%arg0: i32, %arg1: memref<8x256xf32, #tpu.memory_space<vmem>>, %arg2: memref<8x256xf32, #tpu.memory_space<vmem>>, %arg3: memref<8x1xi32, #tpu.memory_space<vmem>>, %arg4: memref<128x256xf32, #tpu.memory_space<vmem>>, %arg5: memref<1x128xf32, #tpu.memory_space<vmem>>, %arg6: memref<128x256xf32, #tpu.memory_space<vmem>>, %arg7: memref<128x256xf32, #tpu.memory_space<vmem>>, %arg8: memref<128x1xf32, #tpu.memory_space<vmem>>) attributes {dimension_semantics = [#tpu.dimension_semantics<arbitrary>], iteration_bounds = array<i64: 2>, scalar_prefetch = 0 : i64, scratch_operands = 3 : i64, tpu.core_type = #tpu.core_type<tc>, window_params = [{transform_indices = @transform_0, window_bounds = array<i64: 8, 256>}, {transform_indices = @transform_1, window_bounds = array<i64: 8, 256>}, {transform_indices = @transform_2, window_bounds = array<i64: 8, 1>}, {pipeline_mode = #tpu.pipeline_mode<synchronous>, transform_indices = @transform_3, window_bounds = array<i64: 128, 256>}, {pipeline_mode = #tpu.pipeline_mode<synchronous>, transform_indices = @transform_4, window_bounds = array<i64: 1, 128>}]} {
    %c0_i32 = arith.constant 0 : i32
    %0 = arith.cmpi eq, %arg0, %c0_i32 : i32
    %1 = arith.extui %0 : i1 to i32
    %c0_i32_0 = arith.constant 0 : i32
    %2 = arith.cmpi ne, %1, %c0_i32_0 : i32
    scf.if %2 {
      %cst_22 = arith.constant 0.000000e+00 : f32
      %27 = vector.broadcast %cst_22 : f32 to vector<128x256xf32>
      %c0_23 = arith.constant 0 : index
      %c0_24 = arith.constant 0 : index
      %28 = vector.load %arg6[%c0_23, %c0_24] : memref<128x256xf32, #tpu.memory_space<vmem>>, vector<128x256xf32>
      tpu.vector_store %arg6[%c0_23, %c0_24], %27 {strides = array<i32>} : memref<128x256xf32, #tpu.memory_space<vmem>>, vector<128x256xf32>,
      %cst_25 = arith.constant 0.000000e+00 : f32
      %29 = vector.broadcast %cst_25 : f32 to vector<128x256xf32>
      %c0_26 = arith.constant 0 : index
      %c0_27 = arith.constant 0 : index
      %30 = vector.load %arg7[%c0_26, %c0_27] : memref<128x256xf32, #tpu.memory_space<vmem>>, vector<128x256xf32>
      tpu.vector_store %arg7[%c0_26, %c0_27], %29 {strides = array<i32>} : memref<128x256xf32, #tpu.memory_space<vmem>>, vector<128x256xf32>,
      %cst_28 = arith.constant 0.000000e+00 : f32
      %31 = vector.broadcast %cst_28 : f32 to vector<128x1xf32>
      %c0_29 = arith.constant 0 : index
      %c0_30 = arith.constant 0 : index
      %32 = vector.load %arg8[%c0_29, %c0_30] : memref<128x1xf32, #tpu.memory_space<vmem>>, vector<128x1xf32>
      tpu.vector_store %arg8[%c0_29, %c0_30], %31 {strides = array<i32>} : memref<128x1xf32, #tpu.memory_space<vmem>>, vector<128x1xf32>,
    } else {
    }
    %c0 = arith.constant 0 : index
    %c0_1 = arith.constant 0 : index
    %3 = vector.load %arg3[%c0, %c0_1] : memref<8x1xi32, #tpu.memory_space<vmem>>, vector<8x1xi32>
    %4 = tpu.iota {dimensions = array<i32: 1>} : vector<8x128xi32>
    %5 = vector.broadcast %3 : vector<8x1xi32> to vector<8x128xi32>
    %6 = arith.cmpi eq, %5, %4 : vector<8x128xi32>
    %7 = arith.extui %6 : vector<8x128xi1> to vector<8x128xi32>
    %8 = arith.sitofp %7 : vector<8x128xi32> to vector<8x128xf32>
    %c0_2 = arith.constant 0 : index
    %c0_3 = arith.constant 0 : index
    %9 = vector.load %arg1[%c0_2, %c0_3] : memref<8x256xf32, #tpu.memory_space<vmem>>, vector<8x256xf32>
    %c0_4 = arith.constant 0 : index
    %c0_5 = arith.constant 0 : index
    %10 = vector.load %arg2[%c0_4, %c0_5] : memref<8x256xf32, #tpu.memory_space<vmem>>, vector<8x256xf32>
    %c0_6 = arith.constant 0 : index
    %c0_7 = arith.constant 0 : index
    %11 = vector.load %arg6[%c0_6, %c0_7] : memref<128x256xf32, #tpu.memory_space<vmem>>, vector<128x256xf32>
    %cst = arith.constant dense<0.000000e+00> : vector<128x256xf32>
    %12 = tpu.matmul %8, %9, %cst {dimension_numbers = #tpu.dot_dimension_numbers<[0], [0], [1], [1], [0, 1, 1, 1], [], []>} : vector<8x128xf32>, vector<8x256xf32>, vector<128x256xf32> -> vector<128x256xf32>
    %13 = arith.addf %11, %12 : vector<128x256xf32>
    %c0_8 = arith.constant 0 : index
    %c0_9 = arith.constant 0 : index
    %14 = vector.load %arg6[%c0_8, %c0_9] : memref<128x256xf32, #tpu.memory_space<vmem>>, vector<128x256xf32>
    tpu.vector_store %arg6[%c0_8, %c0_9], %13 {strides = array<i32>} : memref<128x256xf32, #tpu.memory_space<vmem>>, vector<128x256xf32>,
    %c0_10 = arith.constant 0 : index
    %c0_11 = arith.constant 0 : index
    %15 = vector.load %arg7[%c0_10, %c0_11] : memref<128x256xf32, #tpu.memory_space<vmem>>, vector<128x256xf32>
    %cst_12 = arith.constant dense<0.000000e+00> : vector<128x256xf32>
    %16 = tpu.matmul %8, %10, %cst_12 {dimension_numbers = #tpu.dot_dimension_numbers<[0], [0], [1], [1], [0, 1, 1, 1], [], []>} : vector<8x128xf32>, vector<8x256xf32>, vector<128x256xf32> -> vector<128x256xf32>
    %17 = arith.addf %15, %16 : vector<128x256xf32>
    %c0_13 = arith.constant 0 : index
    %c0_14 = arith.constant 0 : index
    %18 = vector.load %arg7[%c0_13, %c0_14] : memref<128x256xf32, #tpu.memory_space<vmem>>, vector<128x256xf32>
    tpu.vector_store %arg7[%c0_13, %c0_14], %17 {strides = array<i32>} : memref<128x256xf32, #tpu.memory_space<vmem>>, vector<128x256xf32>,
    %cst_15 = arith.constant 1.000000e+00 : f32
    %19 = vector.broadcast %cst_15 : f32 to vector<8x1xf32>
    %c0_16 = arith.constant 0 : index
    %c0_17 = arith.constant 0 : index
    %20 = vector.load %arg8[%c0_16, %c0_17] : memref<128x1xf32, #tpu.memory_space<vmem>>, vector<128x1xf32>
    %cst_18 = arith.constant dense<0.000000e+00> : vector<128x1xf32>
    %21 = tpu.matmul %8, %19, %cst_18 {dimension_numbers = #tpu.dot_dimension_numbers<[0], [0], [1], [1], [0, 1, 1, 1], [], []>} : vector<8x128xf32>, vector<8x1xf32>, vector<128x1xf32> -> vector<128x1xf32>
    %22 = arith.addf %20, %21 : vector<128x1xf32>
    %c0_19 = arith.constant 0 : index
    %c0_20 = arith.constant 0 : index
    %23 = vector.load %arg8[%c0_19, %c0_20] : memref<128x1xf32, #tpu.memory_space<vmem>>, vector<128x1xf32>
    tpu.vector_store %arg8[%c0_19, %c0_20], %22 {strides = array<i32>} : memref<128x1xf32, #tpu.memory_space<vmem>>, vector<128x1xf32>,
    %c1_i32 = arith.constant 1 : i32
    %24 = arith.cmpi eq, %arg0, %c1_i32 : i32
    %25 = arith.extui %24 : i1 to i32
    %c0_i32_21 = arith.constant 0 : i32
    %26 = arith.cmpi ne, %25, %c0_i32_21 : i32
    scf.if %26 {
      %c0_22 = arith.constant 0 : index
      %c0_23 = arith.constant 0 : index
      %27 = vector.load %arg8[%c0_22, %c0_23] : memref<128x1xf32, #tpu.memory_space<vmem>>, vector<128x1xf32>
      %cst_24 = arith.constant 1.000000e+00 : f32
      %28 = vector.broadcast %cst_24 : f32 to vector<128x1xf32>
      %29 = arith.maximumf %27, %28 : vector<128x1xf32>
      %cst_25 = arith.constant 1.000000e+00 : f32
      %30 = vector.broadcast %cst_25 : f32 to vector<128x1xf32>
      %31 = arith.divf %30, %29 : vector<128x1xf32>
      %c0_26 = arith.constant 0 : index
      %c0_27 = arith.constant 0 : index
      %32 = vector.load %arg6[%c0_26, %c0_27] : memref<128x256xf32, #tpu.memory_space<vmem>>, vector<128x256xf32>
      %33 = vector.broadcast %31 : vector<128x1xf32> to vector<128x256xf32>
      %34 = arith.mulf %32, %33 : vector<128x256xf32>
      %c0_28 = arith.constant 0 : index
      %c0_29 = arith.constant 0 : index
      %35 = vector.load %arg7[%c0_28, %c0_29] : memref<128x256xf32, #tpu.memory_space<vmem>>, vector<128x256xf32>
      %36 = vector.broadcast %31 : vector<128x1xf32> to vector<128x256xf32>
      %37 = arith.mulf %35, %36 : vector<128x256xf32>
      %c0_30 = arith.constant 0 : index
      %c0_31 = arith.constant 0 : index
      %38 = vector.load %arg4[%c0_30, %c0_31] : memref<128x256xf32, #tpu.memory_space<vmem>>, vector<128x256xf32>
      %39 = arith.subf %34, %38 : vector<128x256xf32>
      %40 = arith.subf %37, %38 : vector<128x256xf32>
      %41 = arith.subf %34, %37 : vector<128x256xf32>
      %42 = arith.mulf %39, %39 : vector<128x256xf32>
      %43 = vector.broadcast %27 : vector<128x1xf32> to vector<128x256xf32>
      %44 = arith.mulf %43, %42 : vector<128x256xf32>
      %45 = vector.shape_cast %44 : vector<128x256xf32> to vector<1x128x256xf32>
      %cst_32 = arith.constant dense<0.000000e+00> : vector<1xf32>
      %46 = vector.multi_reduction <add>, %45, %cst_32 [1, 2] : vector<1x128x256xf32> to vector<1xf32>
      %47 = vector.shape_cast %46 : vector<1xf32> to vector<1x1x1xf32>
      %48 = vector.extract %47[0, 0, 0] : f32 from vector<1x1x1xf32>
      %cst_33 = arith.constant 2.44140625E-4 : f32
      %49 = arith.mulf %48, %cst_33 : f32
      %50 = arith.mulf %40, %40 : vector<128x256xf32>
      %51 = vector.broadcast %27 : vector<128x1xf32> to vector<128x256xf32>
      %52 = arith.mulf %51, %50 : vector<128x256xf32>
      %53 = vector.shape_cast %52 : vector<128x256xf32> to vector<1x128x256xf32>
      %cst_34 = arith.constant dense<0.000000e+00> : vector<1xf32>
      %54 = vector.multi_reduction <add>, %53, %cst_34 [1, 2] : vector<1x128x256xf32> to vector<1xf32>
      %55 = vector.shape_cast %54 : vector<1xf32> to vector<1x1x1xf32>
      %56 = vector.extract %55[0, 0, 0] : f32 from vector<1x1x1xf32>
      %cst_35 = arith.constant 2.44140625E-4 : f32
      %57 = arith.mulf %56, %cst_35 : f32
      %58 = arith.mulf %41, %41 : vector<128x256xf32>
      %59 = vector.broadcast %27 : vector<128x1xf32> to vector<128x256xf32>
      %60 = arith.mulf %59, %58 : vector<128x256xf32>
      %61 = vector.shape_cast %60 : vector<128x256xf32> to vector<1x128x256xf32>
      %cst_36 = arith.constant dense<0.000000e+00> : vector<1xf32>
      %62 = vector.multi_reduction <add>, %61, %cst_36 [1, 2] : vector<1x128x256xf32> to vector<1xf32>
      %63 = vector.shape_cast %62 : vector<1xf32> to vector<1x1x1xf32>
      %64 = vector.extract %63[0, 0, 0] : f32 from vector<1x1x1xf32>
      %cst_37 = arith.constant 2.44140625E-4 : f32
      %65 = arith.mulf %64, %cst_37 : f32
      %66 = tpu.iota {dimensions = array<i32: 1>} : vector<1x128xi32>
      %c0_i32_38 = arith.constant 0 : i32
      %67 = vector.broadcast %c0_i32_38 : i32 to vector<1x128xi32>
      %68 = arith.cmpi eq, %66, %67 : vector<1x128xi32>
      %c1_i32_39 = arith.constant 1 : i32
      %69 = vector.broadcast %c1_i32_39 : i32 to vector<1x128xi32>
      %70 = arith.cmpi eq, %66, %69 : vector<1x128xi32>
      %c2_i32 = arith.constant 2 : i32
      %71 = vector.broadcast %c2_i32 : i32 to vector<1x128xi32>
      %72 = arith.cmpi eq, %66, %71 : vector<1x128xi32>
      %cst_40 = arith.constant 0.000000e+00 : f32
      %73 = vector.broadcast %65 : f32 to vector<1x128xf32>
      %74 = vector.broadcast %cst_40 : f32 to vector<1x128xf32>
      %75 = arith.select %72, %73, %74 : vector<1x128xi1>, vector<1x128xf32>
      %76 = vector.broadcast %57 : f32 to vector<1x128xf32>
      %77 = arith.select %70, %76, %75 : vector<1x128xi1>, vector<1x128xf32>
      %78 = vector.broadcast %49 : f32 to vector<1x128xf32>
      %79 = arith.select %68, %78, %77 : vector<1x128xi1>, vector<1x128xf32>
      %c0_41 = arith.constant 0 : index
      %c0_42 = arith.constant 0 : index
      %80 = vector.load %arg5[%c0_41, %c0_42] : memref<1x128xf32, #tpu.memory_space<vmem>>, vector<1x128xf32>
      tpu.vector_store %arg5[%c0_41, %c0_42], %79 {strides = array<i32>} : memref<1x128xf32, #tpu.memory_space<vmem>>, vector<1x128xf32>,
    } else {
    }
    return
  }
  func.func @transform_0(%arg0: i32) -> (i32, i32) {
    %c0_i32 = arith.constant 0 : i32
    %c0_i32_0 = arith.constant 0 : i32
    return %arg0, %c0_i32 : i32, i32
  }
  func.func @transform_1(%arg0: i32) -> (i32, i32) {
    %c0_i32 = arith.constant 0 : i32
    %c0_i32_0 = arith.constant 0 : i32
    return %arg0, %c0_i32 : i32, i32
  }
  func.func @transform_2(%arg0: i32) -> (i32, i32) {
    %c0_i32 = arith.constant 0 : i32
    %c0_i32_0 = arith.constant 0 : i32
    return %arg0, %c0_i32 : i32, i32
  }
  func.func @transform_3(%arg0: i32) -> (i32, i32) {
    %c0_i32 = arith.constant 0 : i32
    %c0_i32_0 = arith.constant 0 : i32
    %c0_i32_1 = arith.constant 0 : i32
    return %c0_i32, %c0_i32_0 : i32, i32
  }
  func.func @transform_4(%arg0: i32) -> (i32, i32) {
    %c0_i32 = arith.constant 0 : i32
    %c0_i32_0 = arith.constant 0 : i32
    %c0_i32_1 = arith.constant 0 : i32
    return %c0_i32, %c0_i32_0 : i32, i32
  }
}

</mosaic_0001>

<bundles_post_ra>
// kernel: tpu_custom_call.1
= control target key start
LH: loop header
LB: loop body
LE: loop exit
PB: predicated region body
PF: predicated region fallthrough
CT: control target
= control target key end

     0   :  { %9 = vsyncpa [#allocation6], 0  ;;  %s3102_s0 = inlined_call_operand.hbm [shape: f32[16,256], index: 0, kind: input, shape index: {}]   ;;  %s3103_s1 = inlined_call_operand.hbm [shape: f32[16,256], index: 1, kind: input, shape index: {}]   ;;  %s3104_s2 = inlined_call_operand.vmem [shape: s32[16,1], index: 2, kind: input, shape index: {}]   ;;  %s3105_s3 = inlined_call_operand.hbm [shape: f32[128,256], index: 3, kind: input, shape index: {}]   ;;  %s3106_s4 = inlined_call_operand.hbm [shape: f32[1,128], index: 4, kind: output, shape index: {}]  }
   0x1   :  { %11 = vsyncpa [#allocation6 + $0x1], 0 }
   0x2   :  { %12 = vsyncpa [#allocation9], 0 }
   0x3   :  { %14 = vsyncpa [#allocation9 + $0x1], 0 }
   0x4   :  { %15 = vsyncpa [#allocation7], 0  ;;  %s2485_s15 = smov 0   ;;  %s2487_s16 = smov 0  }
   0x5   :  { %s2489_s17 = smov 0   ;;  %s2491_s18 = smov 0  }
   0x6 LB: > { %s2504_s19 = sadd.s32 4294967295, %s2447_s18   ;;  %p41_p0 = scmp.ne.s32.totalorder %s2439_s16, %s2435_s15  ;;  %s2447_s18 = sphi %s2491_s18, %s3122_s18   ;;  %s2443_s17 = sphi %s2489_s17, %s3121_s17   ;;  %s2439_s16 = sphi %s2487_s16, %s3120_s16   ;;  %s2435_s15 = sphi %s2485_s15, %s3119_s15  }
   0x7   : > { %p3107_p1 = scmp.eq.s32.totalorder %s2504_s19, 0  ;;  %p2069_p2 = scmp.ge.s32.totalorder %s2447_s18, 1 }
   0x8   : > { %p146_p3 = scmp.lt.s32.totalorder %s2447_s18, 3  ;;  %s2449_s22 = smov [#allocation10]  }
   0x9   : > { %p2513_p5 = por %p3107_p1, %p41_p0  ;;  %s158_s23 = sshll.u32 %s2449_s22, 4  ;;  %s159_s23 = int_to_ptr.vmem [resolvable:$true] %s158_s23 }
   0xa   : > { %p2517_p6 = pnand %p2069_p2, %p146_p3  ;;  %s2530_s25 = sadd.s32 1, %s2447_s18  }
   0xb   : > { %s3110_s20 = scalar_select %p2513_p5, 1, 0 }
   0xc   : > { %s3111_s21 = scalar_select %p2517_p6, 1, 0 }
   0xd   : > { %p2203_p7 = pneg %p2517_p6  ;;  %s28_s26 = sadd.s32 1, %s2443_s17 }
   0xe   : > { %s25_s27 = ssub.s32 %s2447_s18, %s2530_s25  ;;  %s2306_s28 = scalar_lea.vmem %s159_s23, 4096 }
   0xf   : > { %p2525_p8 = pnand %p2203_p7, %p3107_p1  ;;  %p2307_p10 = scmp.ne.s32.totalorder %s159_s23, %s2306_s28 }
  0x10   : > { %p2314_p13 = scmp.lt.s32.totalorder %s159_s23, %s159_s23  ;;  %p2315_p0 = scmp.lt.s32.totalorder %s2306_s28, %s2306_s28 }
  0x11   : > { %p2297_p9 = pneg %p2525_p8 }
  0x12   : > { %p2316_p2 = por %p2315_p0, %p2314_p13 }
  0x13   : > { %p2309_p11 = pnand %p2307_p10, %p2297_p9 }
  0x15   : > { %p2310_p12 = pneg %p2309_p11 }
  0x17   : > { %p2317_p3 = pnand %p2316_p2, %p2310_p12 }
  0x19   : > { %2320 = shalt.err (!%p2317_p3)
}
  0x1a   : > { %s2450_s29 = smov 256   ;;  %s2451_s30 = smov 16  }
  0x1b   : > { %2206 = dma.hbm_to_vmem [thread:$0]  (!%p2525_p8), %s3105_s3, 4096, %s159_s23, [#allocation9], %s2450_s29, %s2450_s29, %s2451_s30  }
  0x1c   : > { %p26_p7 = scmp.eq.s32.totalorder %s25_s27, 0  ;;  %p35_p9 = scmp.ne.s32.totalorder %s2443_s17, %s2439_s16 }
  0x1d   : > { %p36_p10 = scmp.eq.s32.totalorder %s2447_s18, 0  ;;  %p2215_p11 = scmp.lt.s32.totalorder %s2447_s18, 2 }
  0x1e   : > { %s2547_s7 = scalar_select %p26_p7, %s2443_s17, %s28_s26  }
  0x1f   : > { %p37_p12 = por %p36_p10, %p35_p9  ;;  %s172_s8 = sand.u32 1, %s2443_s17  }
  0x20   : > { %s2550_s9 = sshll.u32 %s172_s8, 4  ;;  %s2138_s10 = sshll.u32 %s2447_s18, 8 }
  0x21   : > { %s2556_s13 = scalar_lea.hbm %s3102_s0, %s2138_s10  ;;  %s176_s14 = scalar_lea.vmem [#allocation5], %s2550_s9 }
  0x22   : > { %s184_s15 = sshll.u32 %s176_s14, 4  ;;  %p2561_p8 = pnand %p2215_p11, %p37_p12  ;;  %s2559_s15 = int_to_ptr.vmem [resolvable:$true] %s184_s15 }
  0x23   : > { %s2568_s26 = scalar_lea.hbm %s3103_s1, %s2138_s10  ;;  %s191_s27 = sand.u32 1, %s2447_s18  }
  0x24   : > { %s173_s28 = scalar_lea.sflag [#allocation6], %s172_s8  ;;  %s2321_s29 = scalar_lea.hbm %s2556_s13, 256 }
  0x25   : > { %p2322_p13 = scmp.ne.s32.totalorder %s2556_s13, %s2321_s29  ;;  %p2323_p0 = pneg %p2561_p8 }
  0x26   : > { %s2326_s6 = scalar_lea.hbm %s3102_s0, 512  ;;  %p2327_p7 = scmp.lt.s32.totalorder %s2556_s13, %s3102_s0 }
  0x27   : > { %p2324_p2 = pnand %p2323_p0, %p2322_p13  ;;  %p2328_p9 = scmp.lt.s32.totalorder %s2326_s6, %s2321_s29 }
  0x29   : > { %p2325_p3 = pneg %p2324_p2  ;;  %p2329_p10 = por %p2328_p9, %p2327_p7 }
  0x2b   : > { %p2330_p11 = pnand %p2329_p10, %p2325_p3 }
  0x2d   : > { %2333 = shalt.err (!%p2330_p11)
}
  0x2e   : > { %s2334_s8 = scalar_lea.vmem %s2559_s15, 256  ;;  %s2452_s10 = smov [#allocation5]  }
  0x2f   : > { %p2335_p12 = scmp.ne.s32.totalorder %s2559_s15, %s2334_s8  ;;  %s2339_s14 = sshll.u32 %s2452_s10, 4  ;;  %s2340_s14 = int_to_ptr.vmem [resolvable:$false] %s2339_s14 }
  0x30   : > { %s2341_s23 = scalar_lea.vmem %s2340_s14, 512  ;;  %p2342_p4 = scmp.lt.s32.totalorder %s2559_s15, %s2340_s14 }
  0x31   : > { %p2337_p13 = pnand %p2335_p12, %p2323_p0  ;;  %p2343_p1 = scmp.lt.s32.totalorder %s2341_s23, %s2334_s8 }
  0x33   : > { %p2338_p2 = pneg %p2337_p13  ;;  %p2344_p5 = por %p2343_p1, %p2342_p4 }
  0x35   : > { %p2345_p7 = pnand %p2344_p5, %p2338_p2 }
  0x37   : > { %2348 = shalt.err (!%p2345_p7)
}
  0x38   : > { %2210 = dma.hbm_to_vmem [thread:$0]  (!%p2561_p8), %s2556_s13, 256, %s2559_s15, %s173_s28  }
  0x39   : > { %s195_s24 = scalar_lea.vmem [#allocation8], %s2550_s9  ;;  %s192_s30 = scalar_lea.sflag [#allocation9], %s191_s27 }
  0x3a   : > { %s203_s29 = sshll.u32 %s195_s24, 4  ;;  %s2349_s5 = scalar_lea.hbm %s2568_s26, 256  ;;  %s204_s29 = int_to_ptr.vmem [resolvable:$true] %s203_s29 }
  0x3b   : > { %p2350_p1 = scmp.ne.s32.totalorder %s2568_s26, %s2349_s5  ;;  %s2354_s12 = scalar_lea.hbm %s3103_s1, 512 }
  0x3c   : > { %p2355_p3 = scmp.lt.s32.totalorder %s2568_s26, %s3103_s1  ;;  %p2356_p9 = scmp.lt.s32.totalorder %s2354_s12, %s2349_s5 }
  0x3d   : > { %p2352_p4 = pnand %p2350_p1, %p2323_p0 }
  0x3e   : > { %p2357_p10 = por %p2356_p9, %p2355_p3 }
  0x3f   : > { %p2353_p5 = pneg %p2352_p4 }
  0x41   : > { %p2358_p11 = pnand %p2357_p10, %p2353_p5 }
  0x43   : > { %2361 = shalt.err (!%p2358_p11)
}
  0x44   : > { %s2362_s18 = scalar_lea.vmem %s204_s29, 256  ;;  %s2453_s9 = smov [#allocation8]  }
  0x45   : > { %p2363_p12 = scmp.ne.s32.totalorder %s204_s29, %s2362_s18  ;;  %s2367_s13 = sshll.u32 %s2453_s9, 4  ;;  %s2368_s13 = int_to_ptr.vmem [resolvable:$false] %s2367_s13 }
  0x46   : > { %s2369_s15 = scalar_lea.vmem %s2368_s13, 512  ;;  %p2370_p7 = scmp.lt.s32.totalorder %s204_s29, %s2368_s13 }
  0x47   : > { %p2365_p13 = pnand %p2363_p12, %p2323_p0  ;;  %p2371_p1 = scmp.lt.s32.totalorder %s2369_s15, %s2362_s18 }
  0x49   : > { %p2366_p2 = pneg %p2365_p13  ;;  %p2372_p4 = por %p2371_p1, %p2370_p7 }
  0x4b   : > { %p2373_p6 = pnand %p2372_p4, %p2366_p2 }
  0x4d   : > { %2376 = shalt.err (!%p2373_p6)
}
  0x4e   : > { %2213 = dma.hbm_to_vmem [thread:$0]  (!%p2561_p8), %s2568_s26, 256, %s204_s29, %s192_s30  }
  0x4f   : > { %p3114_p5 = scmp.ne.s32.totalorder %s3111_s21, 0 }
  0x50   : > { %s221_s27 = sand.u32 (!%p3114_p5), 1, %s2439_s16   ;;  %p3115_p0 = scmp.ne.s32.totalorder (!%p3114_p5), %s3110_s20, 0 }
  0x51   : > { %219 = sbr.rel (%p3114_p5) target bundleno = 1198 (0x4ae), region = 36  ;;  %s2619_s28 = sshll.u32 (!%p3114_p5), %s221_s27, 4 }
  0x52   : > { %s222_s14 = scalar_lea.sflag (!%p3114_p5), [#allocation6], %s221_s27  ;;  %s225_s23 = scalar_lea.vmem (!%p3114_p5), [#allocation5], %s2619_s28 }
  0x56   : > { %2418 = dma.done.wait (%p3115_p0), %s222_s14, 256  }
  0x57   : > { %2420 = vsyncadd (%p3115_p0), %s222_s14, 4294967040  ;;  %s230_s22 = sand.u32 1, %s2504_s19   ;;  %s234_s21 = scalar_lea.vmem [#allocation8], %s2619_s28 }
  0x58   : > { %s231_s26 = scalar_lea.sflag [#allocation9], %s230_s22 }
  0x59   : > { %2422 = dma.done.wait (%p3115_p0), %s231_s26, 256  }
  0x5a   : > { %2424 = vsyncadd (%p3115_p0), %s231_s26, 4294967040  ;;  %p3116_p6 = scmp.eq.s32.totalorder %s2504_s19, 0 }
  0x5c   : > { %2426 = dma.done.wait (%p3116_p6), [#allocation9], 4096   ;;  %p3117_p8 = pmov %p3116_p6 }
  0x5d   : > { %p267_p3 = scmp.lt.s32.totalorder %s2504_s19, 1  ;;  %p3118_p9 = scmp.ne.s32.totalorder %s2504_s19, 0 }
  0x5e   : > { %2428 = vsyncadd (%p3117_p8), [#allocation9], 4294963200 }
  0x5f   : > { %s268_s24 = scalar_select %p267_p3, %s2504_s19, 1 }
  0x60   : > { %274 = sbr.rel (%p3118_p9) target bundleno = 142 (0x8e), region = 52 }
  0x61   : > { %s2082_s29 = sshll.u32 %s268_s24, 3 }
  0x62   : > { %s2641_s6 = scalar_lea.vmem %s3104_s2, %s2082_s29 }
  0x65   : > { %vm339_vm0 = vcmask 7168   ;;  %v2454_v0 = vmov 0.0  }
  0x66   : > { %275 = vst [vmem:[#allocation2 + $0xb0] sm:$0xff] %v2454_v0  ;;  %276 = vst [vmem:[#allocation2] sm:$0xff] %v2454_v0 }
  0x67   : > { %277 = vst [vmem:[#allocation2 + $0xd8] sm:$0xff] %v2454_v0  ;;  %278 = vst [vmem:[#allocation2 + $0x18] sm:$0xff] %v2454_v0 }
  0x68   : > { %279 = vst [vmem:[#allocation2 + $0x50] sm:$0xff] %v2454_v0  ;;  %280 = vst [vmem:[#allocation2 + $0x68] sm:$0xff] %v2454_v0 }
  0x69   : > { %281 = vst [vmem:[#allocation2 + $0x30] sm:$0xff] %v2454_v0  ;;  %282 = vst [vmem:[#allocation2 + $0x48] sm:$0xff] %v2454_v0 }
  0x6a   : > { %283 = vst [vmem:[#allocation2 + $0x80] sm:$0xff] %v2454_v0  ;;  %284 = vst [vmem:[#allocation2 + $0x88] sm:$0xff] %v2454_v0 }
  0x6b   : > { %285 = vst [vmem:[#allocation2 + $0xe8] sm:$0xff] %v2454_v0  ;;  %286 = vst [vmem:[#allocation2 + $0xb8] sm:$0xff] %v2454_v0 }
  0x6c   : > { %287 = vst [vmem:[#allocation2 + $0x60] sm:$0xff] %v2454_v0  ;;  %288 = vst [vmem:[#allocation2 + $0xf0] sm:$0xff] %v2454_v0 }
  0x6d   : > { %289 = vst [vmem:[#allocation2 + $0x8] sm:$0xff] %v2454_v0  ;;  %290 = vst [vmem:[#allocation2 + $0x78] sm:$0xff] %v2454_v0 }
  0x6e   : > { %291 = vst [vmem:[#allocation2 + $0x38] sm:$0xff] %v2454_v0  ;;  %292 = vst [vmem:[#allocation2 + $0x58] sm:$0xff] %v2454_v0 }
  0x6f   : > { %293 = vst [vmem:[#allocation2 + $0x40] sm:$0xff] %v2454_v0  ;;  %294 = vst [vmem:[#allocation2 + $0xc8] sm:$0xff] %v2454_v0 }
  0x70   : > { %295 = vst [vmem:[#allocation2 + $0xe0] sm:$0xff] %v2454_v0  ;;  %296 = vst [vmem:[#allocation2 + $0x90] sm:$0xff] %v2454_v0 }
  0x71   : > { %297 = vst [vmem:[#allocation2 + $0x70] sm:$0xff] %v2454_v0  ;;  %298 = vst [vmem:[#allocation2 + $0xc0] sm:$0xff] %v2454_v0 }
  0x72   : > { %299 = vst [vmem:[#allocation2 + $0xa8] sm:$0xff] %v2454_v0  ;;  %300 = vst [vmem:[#allocation2 + $0xd0] sm:$0xff] %v2454_v0 }
  0x73   : > { %301 = vst [vmem:[#allocation2 + $0x10] sm:$0xff] %v2454_v0  ;;  %302 = vst [vmem:[#allocation2 + $0x28] sm:$0xff] %v2454_v0 }
  0x74   : > { %303 = vst [vmem:[#allocation2 + $0xa0] sm:$0xff] %v2454_v0  ;;  %304 = vst [vmem:[#allocation2 + $0xf8] sm:$0xff] %v2454_v0 }
  0x75   : > { %305 = vst [vmem:[#allocation2 + $0x20] sm:$0xff] %v2454_v0  ;;  %306 = vst [vmem:[#allocation2 + $0x98] sm:$0xff] %v2454_v0 }
  0x76   : > { %307 = vst [vmem:[#allocation3 + $0x80] sm:$0xff] %v2454_v0  ;;  %308 = vst [vmem:[#allocation3 + $0xc8] sm:$0xff] %v2454_v0 }
  0x77   : > { %309 = vst [vmem:[#allocation3 + $0xe8] sm:$0xff] %v2454_v0  ;;  %310 = vst [vmem:[#allocation3 + $0x78] sm:$0xff] %v2454_v0 }
  0x78   : > { %311 = vst [vmem:[#allocation3 + $0x8] sm:$0xff] %v2454_v0  ;;  %312 = vst [vmem:[#allocation3 + $0x90] sm:$0xff] %v2454_v0 }
  0x79   : > { %313 = vst [vmem:[#allocation3 + $0x58] sm:$0xff] %v2454_v0  ;;  %314 = vst [vmem:[#allocation3 + $0xa8] sm:$0xff] %v2454_v0 }
  0x7a   : > { %315 = vst [vmem:[#allocation3 + $0xd0] sm:$0xff] %v2454_v0  ;;  %316 = vst [vmem:[#allocation3 + $0xb0] sm:$0xff] %v2454_v0 }
  0x7b   : > { %317 = vst [vmem:[#allocation3 + $0x38] sm:$0xff] %v2454_v0  ;;  %318 = vst [vmem:[#allocation3 + $0x40] sm:$0xff] %v2454_v0 }
  0x7c   : > { %319 = vst [vmem:[#allocation3 + $0xe0] sm:$0xff] %v2454_v0  ;;  %320 = vst [vmem:[#allocation3 + $0x60] sm:$0xff] %v2454_v0 }
  0x7d   : > { %321 = vst [vmem:[#allocation3 + $0x18] sm:$0xff] %v2454_v0  ;;  %322 = vst [vmem:[#allocation3 + $0x68] sm:$0xff] %v2454_v0 }
  0x7e   : > { %323 = vst [vmem:[#allocation3 + $0x10] sm:$0xff] %v2454_v0  ;;  %324 = vst [vmem:[#allocation3 + $0x70] sm:$0xff] %v2454_v0 }
  0x7f   : > { %325 = vst [vmem:[#allocation3 + $0x50] sm:$0xff] %v2454_v0  ;;  %326 = vst [vmem:[#allocation3 + $0xa0] sm:$0xff] %v2454_v0 }
  0x80   : > { %327 = vst [vmem:[#allocation3 + $0xd8] sm:$0xff] %v2454_v0  ;;  %328 = vst [vmem:[#allocation3 + $0x30] sm:$0xff] %v2454_v0 }
  0x81   : > { %329 = vst [vmem:[#allocation3 + $0x20] sm:$0xff] %v2454_v0  ;;  %330 = vst [vmem:[#allocation3 + $0xf0] sm:$0xff] %v2454_v0 }
  0x82   : > { %331 = vst [vmem:[#allocation3 + $0x88] sm:$0xff] %v2454_v0  ;;  %332 = vst [vmem:[#allocation3 + $0x48] sm:$0xff] %v2454_v0 }
  0x83   : > { %333 = vst [vmem:[#allocation3 + $0xf8] sm:$0xff] %v2454_v0  ;;  %334 = vst [vmem:[#allocation3 + $0xc0] sm:$0xff] %v2454_v0 }
  0x84   : > { %335 = vst [vmem:[#allocation3 + $0xb8] sm:$0xff] %v2454_v0  ;;  %336 = vst [vmem:[#allocation3] sm:$0xff] %v2454_v0 }
  0x85   : > { %337 = vst [vmem:[#allocation3 + $0x28] sm:$0xff] %v2454_v0  ;;  %338 = vst [vmem:[#allocation3 + $0x98] sm:$0xff] %v2454_v0 }
  0x86   : > { %340 = vst.msk [vmem:[#allocation4] sm:$0xff] %vm339_vm0, %v2454_v0  ;;  %341 = vst.msk [vmem:[#allocation4 + $0x8] sm:$0xff] %vm339_vm0, %v2454_v0 }
  0x87   : > { %342 = vst.msk [vmem:[#allocation4 + $0x10] sm:$0xff] %vm339_vm0, %v2454_v0  ;;  %343 = vst.msk [vmem:[#allocation4 + $0x18] sm:$0xff] %vm339_vm0, %v2454_v0 }
  0x88   : > { %344 = vst.msk [vmem:[#allocation4 + $0x20] sm:$0xff] %vm339_vm0, %v2454_v0  ;;  %345 = vst.msk [vmem:[#allocation4 + $0x28] sm:$0xff] %vm339_vm0, %v2454_v0 }
  0x89   : > { %346 = vst.msk [vmem:[#allocation4 + $0x30] sm:$0xff] %vm339_vm0, %v2454_v0  ;;  %347 = vst.msk [vmem:[#allocation4 + $0x38] sm:$0xff] %vm339_vm0, %v2454_v0 }
  0x8a   : > { %348 = vst.msk [vmem:[#allocation4 + $0x40] sm:$0xff] %vm339_vm0, %v2454_v0  ;;  %349 = vst.msk [vmem:[#allocation4 + $0x48] sm:$0xff] %vm339_vm0, %v2454_v0 }
  0x8b   : > { %350 = vst.msk [vmem:[#allocation4 + $0x50] sm:$0xff] %vm339_vm0, %v2454_v0  ;;  %351 = vst.msk [vmem:[#allocation4 + $0x58] sm:$0xff] %vm339_vm0, %v2454_v0 }
  0x8c   : > { %352 = vst.msk [vmem:[#allocation4 + $0x60] sm:$0xff] %vm339_vm0, %v2454_v0  ;;  %353 = vst.msk [vmem:[#allocation4 + $0x68] sm:$0xff] %vm339_vm0, %v2454_v0 }
  0x8d   : > { %354 = vst.msk [vmem:[#allocation4 + $0x70] sm:$0xff] %vm339_vm0, %v2454_v0  ;;  %355 = vst.msk [vmem:[#allocation4 + $0x78] sm:$0xff] %vm339_vm0, %v2454_v0 }
  0x8e PF: > { %v356_v1 = vld [vmem:[%s2641_s6] sm:$0xff]  ;;  %v366_v2 = vld [vmem:[%s225_s23 + $0x8] sm:$0xff]  ;;  %v2455_v4 = vmov 0   ;;  %v2456_v5 = vmov 0.0   ;;  %v357_v6 = vlaneseq  ;;  %v2457_v11 = vmov 1.0   ;;  %v369_v29 = vld [vmem:[#allocation2 + $0xb0] sm:$0xff] }
  0x8f   : > { %v365_v3 = vld [vmem:[%s225_s23] sm:$0xff]  ;;  %2260 = vset.pattern.permute.xlu0 %v2455_v4  ;;  %512 = vmatprep.subr.mxu0 %v366_v2  ;;  %v368_v10 = vld [vmem:[%s234_s21 + $0x8] sm:$0xff]  ;;  %vm433_vm2 = vcmask 64512   ;;  %vm1141_vm3 = vcmask 7168   ;;  %p2133_p10 = scmp.ne.s32.totalorder %s2504_s19, 1 }
  0x90   : > { %360 = vperm.xlu0 %2260, %v356_v1   ;;  %513 = vmatpush1.msra.mxu0 %v365_v3  ;;  %v2748_v7 = vand.u32 127, %v357_v6  ;;  %v367_v24 = vld [vmem:[%s234_s21] sm:$0xff]  ;;  %v371_v34 = vld [vmem:[#allocation2 + $0xd8] sm:$0xff]  ;;  %v374_v43 = vld [vmem:[#allocation2 + $0x68] sm:$0xff] }
  0x91   : > { %546 = vmatprep.mubr.f32.mxu0 %v2456_v5  ;;  %2183 = vmatprep.subr.mxu1 %v366_v2  ;;  %v370_v31 = vld [vmem:[#allocation2] sm:$0xff]  ;;  %v372_v37 = vld [vmem:[#allocation2 + $0x18] sm:$0xff]  ;;  %v373_v40 = vld [vmem:[#allocation2 + $0x50] sm:$0xff] }
  0x92   : > { %2184 = vmatpush1.msra.mxu1 %v365_v3  ;;  %618 = vmatprep.mubr.f32.mxu1 %v2456_v5  ;;  %v375_v46 = vld [vmem:[#allocation2 + $0x30] sm:$0xff]  ;;  %v376_v49 = vld [vmem:[#allocation2 + $0x48] sm:$0xff]  ;;  %v377_v52 = vld [vmem:[#allocation2 + $0x80] sm:$0xff] }
  0x93   : > { %2157 = vmatprep.subr.mxu0 %v2457_v11  ;;  %769 = vmatprep.subr.mxu1 %v368_v10  ;;  %v378_v55 = vld [vmem:[#allocation2 + $0x88] sm:$0xff]  ;;  %v380_v61 = vld [vmem:[#allocation2 + $0xb8] sm:$0xff]  ;;  %v381_v0 = vld [vmem:[#allocation2 + $0x60] sm:$0xff] }
  0x94   : > { %v379_v58 = vld [vmem:[#allocation2 + $0xe8] sm:$0xff]  ;;  %v382_v3 = vld [vmem:[#allocation2 + $0xf0] sm:$0xff]  ;;  %v384_v10 = vld [vmem:[#allocation2 + $0x78] sm:$0xff] }
  0x95   : > { %v383_v6 = vld [vmem:[#allocation2 + $0x8] sm:$0xff] }
 0x10b   : > { %v361_v8 = vpop.permute.xlu0 %360 }
 0x10c   : > { %vm362_vm1 = vcmp.eq.s32.totalorder %v361_v8, %v2748_v7 }
 0x10d   : > { %v2084_v9 = vsel %vm362_vm1, 1.0, %v2456_v5 }
 0x10e   : > { %401 = vxpose.xlu0.b32.start.end [1/1] (short) %v2084_v9, 128 }
 0x18a   : > { %v417_v12 = vpop.trf.xlu0 }
 0x18b   : > { %2085 = vmatmul.mubr.msk.f32.vlgmr.msra.gmra.mxu0 %vm433_vm2, %v417_v12 }
 0x18c   : > { %552 = vmatprep.mubr.f32.mxu0 %v2456_v5  ;;  %2158 = vmatpush3.msra.mxu0 %v2457_v11 }
 0x18e   : > { %v418_v13 = vpop.trf.xlu0 }
 0x18f   : > { %2086 = vmatmul.mubr.msk.f32.gmra.mxu0 %vm433_vm2, %v418_v13 }
 0x190   : > { %558 = vmatprep.mubr.f32.mxu0 %v2456_v5 }
 0x192   : > { %v419_v14 = vpop.trf.xlu0 }
 0x193   : > { %2087 = vmatmul.mubr.msk.f32.gmra.mxu0 %vm433_vm2, %v419_v14 }
 0x194   : > { %564 = vmatprep.mubr.f32.mxu0 %v2456_v5 }
 0x196   : > { %v420_v15 = vpop.trf.xlu0 }
 0x197   : > { %2088 = vmatmul.mubr.msk.f32.gmra.mxu0 %vm433_vm2, %v420_v15 }
 0x198   : > { %570 = vmatprep.mubr.f32.mxu0 %v2456_v5 }
 0x19a   : > { %v421_v16 = vpop.trf.xlu0 }
 0x19b   : > { %2089 = vmatmul.mubr.msk.f32.gmra.mxu0 %vm433_vm2, %v421_v16 }
 0x19c   : > { %576 = vmatprep.mubr.f32.mxu0 %v2456_v5 }
 0x19e   : > { %v422_v17 = vpop.trf.xlu0 }
 0x19f   : > { %2090 = vmatmul.mubr.msk.f32.gmra.mxu0 %vm433_vm2, %v422_v17 }
 0x1a0   : > { %582 = vmatprep.mubr.f32.mxu0 %v2456_v5 }
 0x1a2   : > { %v423_v18 = vpop.trf.xlu0 }
 0x1a3   : > { %2091 = vmatmul.mubr.msk.f32.gmra.mxu0 %vm433_vm2, %v423_v18 }
 0x1a4   : > { %588 = vmatprep.mubr.f32.mxu0 %v2456_v5 }
 0x1a6   : > { %v424_v19 = vpop.trf.xlu0 }
 0x1a7   : > { %2092 = vmatmul.mubr.msk.f32.gmra.mxu0 %vm433_vm2, %v424_v19 }
 0x1a8   : > { %594 = vmatprep.mubr.f32.mxu0 %v2456_v5 }
 0x1aa   : > { %v425_v20 = vpop.trf.xlu0 }
 0x1ab   : > { %2093 = vmatmul.mubr.msk.f32.gmra.mxu0 %vm433_vm2, %v425_v20 }
 0x1ac   : > { %600 = vmatprep.mubr.f32.mxu0 %v2456_v5 }
 0x1ae   : > { %v426_v21 = vpop.trf.xlu0 }
 0x1af   : > { %2094 = vmatmul.mubr.msk.f32.gmra.mxu0 %vm433_vm2, %v426_v21 }
 0x1b0   : > { %606 = vmatprep.mubr.f32.mxu0 %v2456_v5 }
 0x1b2   : > { %v427_v22 = vpop.trf.xlu0 }
 0x1b3   : > { %2095 = vmatmul.mubr.msk.f32.gmra.mxu0 %vm433_vm2, %v427_v22 }
 0x1b4   : > { %612 = vmatprep.mubr.f32.mxu0 %v2456_v5 }
 0x1b6   : > { %v428_v23 = vpop.trf.xlu0 }
 0x1b7   : > { %2096 = vmatmul.mubr.msk.f32.gmra.mxu0 %vm433_vm2, %v428_v23 }
 0x1b8   : > { %2159 = vmatprep.mubr.msk.f32.mxu0 %vm433_vm2, %v417_v12 }
 0x1ba   : > { %v429_v25 = vpop.trf.xlu0 }
 0x1bb   : > { %2097 = vmatmul.mubr.msk.f32.vlgmr.msra.gmra.mxu1 %vm433_vm2, %v429_v25  ;;  %2160 = vmatmul.mubr.msk.f32.vlgmr.msra.gmra.mxu0 %vm433_vm2, %v418_v13 }
 0x1bc   : > { %770 = vmatpush1.msra.mxu1 %v367_v24  ;;  %2162 = vmatprep.mubr.msk.f32.mxu0 %vm433_vm2, %v419_v14 }
 0x1bd   : > { %624 = vmatprep.mubr.f32.mxu1 %v2456_v5 }
 0x1be   : > { %v430_v26 = vpop.trf.xlu0 }
 0x1bf   : > { %2098 = vmatmul.mubr.msk.f32.gmra.mxu1 %vm433_vm2, %v430_v26  ;;  %2163 = vmatmul.mubr.msk.f32.gmra.mxu0 %vm433_vm2, %v420_v15 }
 0x1c0   : > { %2165 = vmatprep.mubr.msk.f32.mxu0 %vm433_vm2, %v421_v16  ;;  %630 = vmatprep.mubr.f32.mxu1 %v2456_v5 }
 0x1c2   : > { %v431_v27 = vpop.trf.xlu0 }
 0x1c3   : > { %2099 = vmatmul.mubr.msk.f32.gmra.mxu1 %vm433_vm2, %v431_v27  ;;  %2166 = vmatmul.mubr.msk.f32.gmra.mxu0 %vm433_vm2, %v422_v17 }
 0x1c4   : > { %2168 = vmatprep.mubr.msk.f32.mxu0 %vm433_vm2, %v423_v18  ;;  %636 = vmatprep.mubr.f32.mxu1 %v2456_v5 }
 0x1c6   : > { %v432_v28 = vpop.trf.xlu0 }
 0x1c7   : > { %2100 = vmatmul.mubr.msk.f32.gmra.mxu1 %vm433_vm2, %v432_v28  ;;  %2169 = vmatmul.mubr.msk.f32.gmra.mxu0 %vm433_vm2, %v424_v19 }
 0x1c8   : > { %2171 = vmatprep.mubr.msk.f32.mxu0 %vm433_vm2, %v425_v20  ;;  %803 = vmatprep.mubr.f32.mxu1 %v2456_v5 }
 0x1cb   : > { %2101 = vmatmul.mubr.msk.f32.vlgmr.msra.gmra.mxu1 %vm433_vm2, %v417_v12  ;;  %2172 = vmatmul.mubr.msk.f32.gmra.mxu0 %vm433_vm2, %v426_v21 }
 0x1cc   : > { %2174 = vmatprep.mubr.msk.f32.mxu0 %vm433_vm2, %v427_v22  ;;  %809 = vmatprep.mubr.f32.mxu1 %v2456_v5 }
 0x1cf   : > { %2102 = vmatmul.mubr.msk.f32.gmra.mxu1 %vm433_vm2, %v418_v13  ;;  %2175 = vmatmul.mubr.msk.f32.gmra.mxu0 %vm433_vm2, %v428_v23  ;;  %v385_v13 = vld [vmem:[#allocation2 + $0x38] sm:$0xff] }
 0x1d0   : > { %2177 = vmatprep.mubr.msk.f32.mxu0 %vm433_vm2, %v429_v25  ;;  %815 = vmatprep.mubr.f32.mxu1 %v2456_v5 }
 0x1d3   : > { %2103 = vmatmul.mubr.msk.f32.gmra.mxu1 %vm433_vm2, %v419_v14  ;;  %2178 = vmatmul.mubr.msk.f32.gmra.mxu0 %vm433_vm2, %v430_v26 }
 0x1d4   : > { %2180 = vmatprep.mubr.msk.f32.mxu0 %vm433_vm2, %v431_v27  ;;  %821 = vmatprep.mubr.f32.mxu1 %v2456_v5 }
 0x1d7   : > { %2104 = vmatmul.mubr.msk.f32.gmra.mxu1 %vm433_vm2, %v420_v15  ;;  %2181 = vmatmul.mubr.msk.f32.gmra.mxu0 %vm433_vm2, %v432_v28 }
 0x1d8   : > { %827 = vmatprep.mubr.f32.mxu1 %v2456_v5 }
 0x1db   : > { %2105 = vmatmul.mubr.msk.f32.gmra.mxu1 %vm433_vm2, %v421_v16  ;;  %v386_v16 = vld [vmem:[#allocation2 + $0x58] sm:$0xff] }
 0x1dc   : > { %833 = vmatprep.mubr.f32.mxu1 %v2456_v5 }
 0x1df   : > { %2106 = vmatmul.mubr.msk.f32.gmra.mxu1 %vm433_vm2, %v422_v17 }
 0x1e0   : > { %839 = vmatprep.mubr.f32.mxu1 %v2456_v5 }
 0x1e3   : > { %2107 = vmatmul.mubr.msk.f32.gmra.mxu1 %vm433_vm2, %v423_v18 }
 0x1e4   : > { %845 = vmatprep.mubr.f32.mxu1 %v2456_v5 }
 0x1e7   : > { %2108 = vmatmul.mubr.msk.f32.gmra.mxu1 %vm433_vm2, %v424_v19  ;;  %v387_v19 = vld [vmem:[#allocation2 + $0x40] sm:$0xff] }
 0x1e8   : > { %851 = vmatprep.mubr.f32.mxu1 %v2456_v5 }
 0x1eb   : > { %2109 = vmatmul.mubr.msk.f32.gmra.mxu1 %vm433_vm2, %v425_v20 }
 0x1ec   : > { %857 = vmatprep.mubr.f32.mxu1 %v2456_v5 }
 0x1ef   : > { %2110 = vmatmul.mubr.msk.f32.gmra.mxu1 %vm433_vm2, %v426_v21 }
 0x1f0   : > { %863 = vmatprep.mubr.f32.mxu1 %v2456_v5 }
 0x1f3   : > { %2111 = vmatmul.mubr.msk.f32.gmra.mxu1 %vm433_vm2, %v427_v22  ;;  %v388_v22 = vld [vmem:[#allocation2 + $0xc8] sm:$0xff] }
 0x1f4   : > { %869 = vmatprep.mubr.f32.mxu1 %v2456_v5 }
 0x1f7   : > { %2112 = vmatmul.mubr.msk.f32.gmra.mxu1 %vm433_vm2, %v428_v23 }
 0x1f8   : > { %875 = vmatprep.mubr.f32.mxu1 %v2456_v5 }
 0x1fb   : > { %2113 = vmatmul.mubr.msk.f32.gmra.mxu1 %vm433_vm2, %v429_v25  ;;  %v389_v25 = vld [vmem:[#allocation2 + $0xe0] sm:$0xff] }
 0x1fc   : > { %881 = vmatprep.mubr.f32.mxu1 %v2456_v5 }
 0x1ff   : > { %2114 = vmatmul.mubr.msk.f32.gmra.mxu1 %vm433_vm2, %v430_v26 }
 0x200   : > { %887 = vmatprep.mubr.f32.mxu1 %v2456_v5 }
 0x203   : > { %2115 = vmatmul.mubr.msk.f32.gmra.mxu1 %vm433_vm2, %v431_v27 }
 0x204   : > { %893 = vmatprep.mubr.f32.mxu1 %v2456_v5 }
 0x207   : > { %2116 = vmatmul.mubr.msk.f32.gmra.mxu1 %vm433_vm2, %v432_v28  ;;  %v390_v28 = vld [vmem:[#allocation2 + $0x90] sm:$0xff] }
 0x24b   : > { %v548_v30 = vpop.f32.mrf.mxu0 }
 0x24c   : > { %v643_v32 = vadd.f32 %v548_v30, %v369_v29 }
 0x24d   : > { %v550_v33 = vpop.f32.mrf.mxu0 }
 0x24e   : > { %675 = vst [vmem:[#allocation2 + $0xb0] sm:$0xff] %v643_v32  ;;  %v644_v35 = vadd.f32 %v550_v33, %v370_v31  ;;  %v391_v31 = vld [vmem:[#allocation2 + $0x70] sm:$0xff] }
 0x24f   : > { %v554_v36 = vpop.f32.mrf.mxu0 }
 0x250   : > { %676 = vst [vmem:[#allocation2] sm:$0xff] %v644_v35  ;;  %v645_v38 = vadd.f32 %v554_v36, %v371_v34  ;;  %v392_v34 = vld [vmem:[#allocation2 + $0xc0] sm:$0xff] }
 0x251   : > { %v556_v39 = vpop.f32.mrf.mxu0 }
 0x252   : > { %677 = vst [vmem:[#allocation2 + $0xd8] sm:$0xff] %v645_v38  ;;  %v646_v41 = vadd.f32 %v556_v39, %v372_v37  ;;  %v393_v37 = vld [vmem:[#allocation2 + $0xa8] sm:$0xff] }
 0x253   : > { %v560_v42 = vpop.f32.mrf.mxu0  ;;  %v965_v38 = vld [vmem:[#allocation4 + $0x8] sm:$0xff] }
 0x254   : > { %678 = vst [vmem:[#allocation2 + $0x18] sm:$0xff] %v646_v41  ;;  %v647_v44 = vadd.f32 %v560_v42, %v373_v40  ;;  %v394_v42 = vld [vmem:[#allocation2 + $0xd0] sm:$0xff] }
 0x255   : > { %v562_v45 = vpop.f32.mrf.mxu0 }
 0x256   : > { %679 = vst [vmem:[#allocation2 + $0x50] sm:$0xff] %v647_v44  ;;  %v648_v47 = vadd.f32 %v562_v45, %v374_v43  ;;  %v964_v43 = vld [vmem:[#allocation4] sm:$0xff] }
 0x257   : > { %v566_v48 = vpop.f32.mrf.mxu0 }
 0x258   : > { %680 = vst [vmem:[#allocation2 + $0x68] sm:$0xff] %v648_v47  ;;  %v649_v50 = vadd.f32 %v566_v48, %v375_v46  ;;  %v395_v48 = vld [vmem:[#allocation2 + $0x10] sm:$0xff] }
 0x259   : > { %v568_v51 = vpop.f32.mrf.mxu0 }
 0x25a   : > { %681 = vst [vmem:[#allocation2 + $0x30] sm:$0xff] %v649_v50  ;;  %v650_v53 = vadd.f32 %v568_v51, %v376_v49  ;;  %v967_v49 = vld [vmem:[#allocation4 + $0x18] sm:$0xff] }
 0x25b   : > { %v572_v54 = vpop.f32.mrf.mxu0 }
 0x25c   : > { %682 = vst [vmem:[#allocation2 + $0x48] sm:$0xff] %v650_v53  ;;  %v651_v56 = vadd.f32 %v572_v54, %v377_v52  ;;  %v396_v54 = vld [vmem:[#allocation2 + $0x28] sm:$0xff] }
 0x25d   : > { %v574_v57 = vpop.f32.mrf.mxu0 }
 0x25e   : > { %683 = vst [vmem:[#allocation2 + $0x80] sm:$0xff] %v651_v56  ;;  %v652_v59 = vadd.f32 %v574_v57, %v378_v55  ;;  %v966_v55 = vld [vmem:[#allocation4 + $0x10] sm:$0xff] }
 0x25f   : > { %v578_v60 = vpop.f32.mrf.mxu0 }
 0x260   : > { %684 = vst [vmem:[#allocation2 + $0x88] sm:$0xff] %v652_v59  ;;  %v653_v62 = vadd.f32 %v578_v60, %v379_v58  ;;  %v397_v60 = vld [vmem:[#allocation2 + $0xa0] sm:$0xff] }
 0x261   : > { %v580_v63 = vpop.f32.mrf.mxu0 }
 0x262   : > { %685 = vst [vmem:[#allocation2 + $0xe8] sm:$0xff] %v653_v62  ;;  %v654_v1 = vadd.f32 %v580_v63, %v380_v61  ;;  %v969_v61 = vld [vmem:[#allocation4 + $0x28] sm:$0xff] }
 0x263   : > { %v584_v2 = vpop.f32.mrf.mxu0 }
 0x264   : > { %686 = vst [vmem:[#allocation2 + $0xb8] sm:$0xff] %v654_v1  ;;  %v655_v4 = vadd.f32 %v584_v2, %v381_v0  ;;  %v398_v2 = vld [vmem:[#allocation2 + $0xf8] sm:$0xff] }
 0x265   : > { %v586_v5 = vpop.f32.mrf.mxu0 }
 0x266   : > { %687 = vst [vmem:[#allocation2 + $0x60] sm:$0xff] %v655_v4  ;;  %v656_v8 = vadd.f32 %v586_v5, %v382_v3  ;;  %v968_v3 = vld [vmem:[#allocation4 + $0x20] sm:$0xff] }
 0x267   : > { %v590_v9 = vpop.f32.mrf.mxu0 }
 0x268   : > { %688 = vst [vmem:[#allocation2 + $0xf0] sm:$0xff] %v656_v8  ;;  %v657_v11 = vadd.f32 %v590_v9, %v383_v6  ;;  %v399_v9 = vld [vmem:[#allocation2 + $0x20] sm:$0xff] }
 0x269   : > { %v592_v12 = vpop.f32.mrf.mxu0 }
 0x26a   : > { %689 = vst [vmem:[#allocation2 + $0x8] sm:$0xff] %v657_v11  ;;  %v658_v14 = vadd.f32 %v592_v12, %v384_v10  ;;  %v971_v10 = vld [vmem:[#allocation4 + $0x38] sm:$0xff] }
 0x26b   : > { %v596_v15 = vpop.f32.mrf.mxu0 }
 0x26c   : > { %690 = vst [vmem:[#allocation2 + $0x78] sm:$0xff] %v658_v14  ;;  %v659_v17 = vadd.f32 %v596_v15, %v385_v13  ;;  %v400_v15 = vld [vmem:[#allocation2 + $0x98] sm:$0xff] }
 0x26d   : > { %v598_v18 = vpop.f32.mrf.mxu0 }
 0x26e   : > { %691 = vst [vmem:[#allocation2 + $0x38] sm:$0xff] %v659_v17  ;;  %v660_v20 = vadd.f32 %v598_v18, %v386_v16  ;;  %v970_v16 = vld [vmem:[#allocation4 + $0x30] sm:$0xff] }
 0x26f   : > { %v602_v21 = vpop.f32.mrf.mxu0 }
 0x270   : > { %692 = vst [vmem:[#allocation2 + $0x58] sm:$0xff] %v660_v20  ;;  %v661_v23 = vadd.f32 %v602_v21, %v387_v19  ;;  %v707_v21 = vld [vmem:[#allocation3 + $0x80] sm:$0xff] }
 0x271   : > { %v604_v24 = vpop.f32.mrf.mxu0 }
 0x272   : > { %693 = vst [vmem:[#allocation2 + $0x40] sm:$0xff] %v661_v23  ;;  %v662_v26 = vadd.f32 %v604_v24, %v388_v22  ;;  %v973_v22 = vld [vmem:[#allocation4 + $0x48] sm:$0xff] }
 0x273   : > { %v608_v27 = vpop.f32.mrf.mxu0 }
 0x274   : > { %694 = vst [vmem:[#allocation2 + $0xc8] sm:$0xff] %v662_v26  ;;  %v663_v29 = vadd.f32 %v608_v27, %v389_v25  ;;  %v708_v27 = vld [vmem:[#allocation3 + $0xc8] sm:$0xff] }
 0x275   : > { %v610_v30 = vpop.f32.mrf.mxu0 }
 0x276   : > { %695 = vst [vmem:[#allocation2 + $0xe0] sm:$0xff] %v663_v29  ;;  %v664_v32 = vadd.f32 %v610_v30, %v390_v28  ;;  %v972_v28 = vld [vmem:[#allocation4 + $0x40] sm:$0xff] }
 0x277   : > { %v614_v33 = vpop.f32.mrf.mxu0 }
 0x278   : > { %696 = vst [vmem:[#allocation2 + $0x90] sm:$0xff] %v664_v32  ;;  %v665_v35 = vadd.f32 %v614_v33, %v391_v31  ;;  %v709_v33 = vld [vmem:[#allocation3 + $0xe8] sm:$0xff] }
 0x279   : > { %v616_v36 = vpop.f32.mrf.mxu0 }
 0x27a   : > { %697 = vst [vmem:[#allocation2 + $0x70] sm:$0xff] %v665_v35  ;;  %v666_v39 = vadd.f32 %v616_v36, %v392_v34  ;;  %v975_v34 = vld [vmem:[#allocation4 + $0x58] sm:$0xff] }
 0x27b   : > { %v620_v40 = vpop.f32.mrf.mxu1  ;;  %v2161_v41 = vpop.f32.mrf.mxu0 }
 0x27c   : > { %698 = vst [vmem:[#allocation2 + $0xc0] sm:$0xff] %v666_v39  ;;  %v667_v44 = vadd.f32 %v620_v40, %v393_v37  ;;  %v1126_v45 = vadd.f32 %v2161_v41, %v965_v38  ;;  %v710_v39 = vld [vmem:[#allocation3 + $0x78] sm:$0xff]  ;;  %v974_v40 = vld [vmem:[#allocation4 + $0x50] sm:$0xff] }
 0x27d   : > { %v622_v46 = vpop.f32.mrf.mxu1  ;;  %v1046_v47 = vpop.f32.mrf.mxu0 }
 0x27e   : > { %699 = vst [vmem:[#allocation2 + $0xa8] sm:$0xff] %v667_v44  ;;  %1143 = vst.msk [vmem:[#allocation4 + $0x8] sm:$0xff] %vm1141_vm3, %v1126_v45  ;;  %v668_v50 = vadd.f32 %v622_v46, %v394_v42  ;;  %v1125_v51 = vadd.f32 %v1046_v47, %v964_v43  ;;  %v711_v45 = vld [vmem:[#allocation3 + $0x8] sm:$0xff] }
 0x27f   : > { %v626_v52 = vpop.f32.mrf.mxu1  ;;  %v2164_v53 = vpop.f32.mrf.mxu0  ;;  %v977_v46 = vld [vmem:[#allocation4 + $0x68] sm:$0xff] }
 0x280   : > { %700 = vst [vmem:[#allocation2 + $0xd0] sm:$0xff] %v668_v50  ;;  %1142 = vst.msk [vmem:[#allocation4] sm:$0xff] %vm1141_vm3, %v1125_v51  ;;  %v669_v56 = vadd.f32 %v626_v52, %v395_v48  ;;  %v1128_v57 = vadd.f32 %v2164_v53, %v967_v49  ;;  %v712_v51 = vld [vmem:[#allocation3 + $0x90] sm:$0xff]  ;;  %v976_v52 = vld [vmem:[#allocation4 + $0x60] sm:$0xff] }
 0x281   : > { %v628_v58 = vpop.f32.mrf.mxu1  ;;  %v1056_v59 = vpop.f32.mrf.mxu0 }
 0x282   : > { %701 = vst [vmem:[#allocation2 + $0x10] sm:$0xff] %v669_v56  ;;  %1145 = vst.msk [vmem:[#allocation4 + $0x18] sm:$0xff] %vm1141_vm3, %v1128_v57  ;;  %v670_v62 = vadd.f32 %v628_v58, %v396_v54  ;;  %v1127_v63 = vadd.f32 %v1056_v59, %v966_v55  ;;  %v713_v57 = vld [vmem:[#allocation3 + $0x58] sm:$0xff] }
 0x283   : > { %v632_v0 = vpop.f32.mrf.mxu1  ;;  %v2167_v1 = vpop.f32.mrf.mxu0  ;;  %v979_v58 = vld [vmem:[#allocation4 + $0x78] sm:$0xff] }
 0x284   : > { %702 = vst [vmem:[#allocation2 + $0x28] sm:$0xff] %v670_v62  ;;  %1144 = vst.msk [vmem:[#allocation4 + $0x10] sm:$0xff] %vm1141_vm3, %v1127_v63  ;;  %v671_v4 = vadd.f32 %v632_v0, %v397_v60  ;;  %v1130_v5 = vadd.f32 %v2167_v1, %v969_v61  ;;  %v714_v63 = vld [vmem:[#allocation3 + $0xa8] sm:$0xff]  ;;  %v978_v0 = vld [vmem:[#allocation4 + $0x70] sm:$0xff] }
 0x285   : > { %v634_v6 = vpop.f32.mrf.mxu1  ;;  %v1066_v8 = vpop.f32.mrf.mxu0 }
 0x286   : > { %703 = vst [vmem:[#allocation2 + $0xa0] sm:$0xff] %v671_v4  ;;  %1147 = vst.msk [vmem:[#allocation4 + $0x28] sm:$0xff] %vm1141_vm3, %v1130_v5  ;;  %v672_v11 = vadd.f32 %v634_v6, %v398_v2  ;;  %v1129_v12 = vadd.f32 %v1066_v8, %v968_v3  ;;  %v715_v5 = vld [vmem:[#allocation3 + $0xd0] sm:$0xff] }
 0x287   : > { %v638_v13 = vpop.f32.mrf.mxu1  ;;  %v2170_v14 = vpop.f32.mrf.mxu0 }
 0x288   : > { %704 = vst [vmem:[#allocation2 + $0xf8] sm:$0xff] %v672_v11  ;;  %1146 = vst.msk [vmem:[#allocation4 + $0x20] sm:$0xff] %vm1141_vm3, %v1129_v12  ;;  %v673_v17 = vadd.f32 %v638_v13, %v399_v9  ;;  %v1132_v18 = vadd.f32 %v2170_v14, %v971_v10  ;;  %v716_v10 = vld [vmem:[#allocation3 + $0xb0] sm:$0xff]  ;;  %v717_v13 = vld [vmem:[#allocation3 + $0x38] sm:$0xff] }
 0x289   : > { %v640_v19 = vpop.f32.mrf.mxu1  ;;  %v1076_v20 = vpop.f32.mrf.mxu0 }
 0x28a   : > { %705 = vst [vmem:[#allocation2 + $0x20] sm:$0xff] %v673_v17  ;;  %1149 = vst.msk [vmem:[#allocation4 + $0x38] sm:$0xff] %vm1141_vm3, %v1132_v18  ;;  %v674_v23 = vadd.f32 %v640_v19, %v400_v15  ;;  %v1131_v24 = vadd.f32 %v1076_v20, %v970_v16  ;;  %v718_v16 = vld [vmem:[#allocation3 + $0x40] sm:$0xff] }
 0x28b   : > { %v805_v25 = vpop.f32.mrf.mxu1  ;;  %v2173_v26 = vpop.f32.mrf.mxu0  ;;  %v719_v19 = vld [vmem:[#allocation3 + $0xe0] sm:$0xff] }
 0x28c   : > { %706 = vst [vmem:[#allocation2 + $0x98] sm:$0xff] %v674_v23  ;;  %1148 = vst.msk [vmem:[#allocation4 + $0x30] sm:$0xff] %vm1141_vm3, %v1131_v24  ;;  %v900_v29 = vadd.f32 %v805_v25, %v707_v21  ;;  %v1134_v30 = vadd.f32 %v2173_v26, %v973_v22  ;;  %v720_v22 = vld [vmem:[#allocation3 + $0x60] sm:$0xff]  ;;  %v721_v25 = vld [vmem:[#allocation3 + $0x18] sm:$0xff] }
 0x28d   : > { %v807_v31 = vpop.f32.mrf.mxu1  ;;  %v1086_v32 = vpop.f32.mrf.mxu0 }
 0x28e   : > { %932 = vst [vmem:[#allocation3 + $0x80] sm:$0xff] %v900_v29  ;;  %1151 = vst.msk [vmem:[#allocation4 + $0x48] sm:$0xff] %vm1141_vm3, %v1134_v30  ;;  %v901_v35 = vadd.f32 %v807_v31, %v708_v27  ;;  %v1133_v36 = vadd.f32 %v1086_v32, %v972_v28  ;;  %v722_v28 = vld [vmem:[#allocation3 + $0x68] sm:$0xff]  ;;  %v723_v31 = vld [vmem:[#allocation3 + $0x10] sm:$0xff] }
 0x28f   : > { %v811_v37 = vpop.f32.mrf.mxu1  ;;  %v2176_v38 = vpop.f32.mrf.mxu0 }
 0x290   : > { %933 = vst [vmem:[#allocation3 + $0xc8] sm:$0xff] %v901_v35  ;;  %1150 = vst.msk [vmem:[#allocation4 + $0x40] sm:$0xff] %vm1141_vm3, %v1133_v36  ;;  %v902_v41 = vadd.f32 %v811_v37, %v709_v33  ;;  %v1136_v42 = vadd.f32 %v2176_v38, %v975_v34  ;;  %v724_v34 = vld [vmem:[#allocation3 + $0x70] sm:$0xff] }
 0x291   : > { %v813_v43 = vpop.f32.mrf.mxu1  ;;  %v1096_v44 = vpop.f32.mrf.mxu0  ;;  %v725_v37 = vld [vmem:[#allocation3 + $0x50] sm:$0xff] }
 0x292   : > { %934 = vst [vmem:[#allocation3 + $0xe8] sm:$0xff] %v902_v41  ;;  %1153 = vst.msk [vmem:[#allocation4 + $0x58] sm:$0xff] %vm1141_vm3, %v1136_v42  ;;  %v903_v47 = vadd.f32 %v813_v43, %v710_v39  ;;  %v1135_v48 = vadd.f32 %v1096_v44, %v974_v40  ;;  %v726_v40 = vld [vmem:[#allocation3 + $0xa0] sm:$0xff]  ;;  %v727_v43 = vld [vmem:[#allocation3 + $0xd8] sm:$0xff] }
 0x293   : > { %v817_v49 = vpop.f32.mrf.mxu1  ;;  %v2179_v50 = vpop.f32.mrf.mxu0 }
 0x294   : > { %935 = vst [vmem:[#allocation3 + $0x78] sm:$0xff] %v903_v47  ;;  %1152 = vst.msk [vmem:[#allocation4 + $0x50] sm:$0xff] %vm1141_vm3, %v1135_v48  ;;  %v904_v53 = vadd.f32 %v817_v49, %v711_v45  ;;  %v1138_v54 = vadd.f32 %v2179_v50, %v977_v46  ;;  %v728_v46 = vld [vmem:[#allocation3 + $0x30] sm:$0xff]  ;;  %v729_v49 = vld [vmem:[#allocation3 + $0x20] sm:$0xff] }
 0x295   : > { %v819_v55 = vpop.f32.mrf.mxu1  ;;  %v1106_v56 = vpop.f32.mrf.mxu0 }
 0x296   : > { %936 = vst [vmem:[#allocation3 + $0x8] sm:$0xff] %v904_v53  ;;  %1155 = vst.msk [vmem:[#allocation4 + $0x68] sm:$0xff] %vm1141_vm3, %v1138_v54  ;;  %v905_v59 = vadd.f32 %v819_v55, %v712_v51  ;;  %v1137_v60 = vadd.f32 %v1106_v56, %v976_v52  ;;  %v730_v52 = vld [vmem:[#allocation3 + $0xf0] sm:$0xff]  ;;  %v731_v55 = vld [vmem:[#allocation3 + $0x88] sm:$0xff] }
 0x297   : > { %v823_v61 = vpop.f32.mrf.mxu1  ;;  %v2182_v62 = vpop.f32.mrf.mxu0 }
 0x298   : > { %937 = vst [vmem:[#allocation3 + $0x90] sm:$0xff] %v905_v59  ;;  %1154 = vst.msk [vmem:[#allocation4 + $0x60] sm:$0xff] %vm1141_vm3, %v1137_v60  ;;  %v906_v1 = vadd.f32 %v823_v61, %v713_v57  ;;  %v1140_v2 = vadd.f32 %v2182_v62, %v979_v58  ;;  %v732_v58 = vld [vmem:[#allocation3 + $0x48] sm:$0xff]  ;;  %v733_v61 = vld [vmem:[#allocation3 + $0xf8] sm:$0xff] }
 0x299   : > { %v825_v3 = vpop.f32.mrf.mxu1  ;;  %v1116_v4 = vpop.f32.mrf.mxu0 }
 0x29a   : > { %938 = vst [vmem:[#allocation3 + $0x58] sm:$0xff] %v906_v1  ;;  %1157 = vst.msk [vmem:[#allocation4 + $0x78] sm:$0xff] %vm1141_vm3, %v1140_v2  ;;  %v907_v6 = vadd.f32 %v825_v3, %v714_v63  ;;  %v1139_v8 = vadd.f32 %v1116_v4, %v978_v0  ;;  %v734_v0 = vld [vmem:[#allocation3 + $0xc0] sm:$0xff]  ;;  %v735_v3 = vld [vmem:[#allocation3 + $0xb8] sm:$0xff] }
 0x29b   : > { %v829_v9 = vpop.f32.mrf.mxu1 }
 0x29c   : > { %939 = vst [vmem:[#allocation3 + $0xa8] sm:$0xff] %v907_v6  ;;  %1156 = vst.msk [vmem:[#allocation4 + $0x70] sm:$0xff] %vm1141_vm3, %v1139_v8  ;;  %v908_v11 = vadd.f32 %v829_v9, %v715_v5  ;;  %v736_v6 = vld [vmem:[#allocation3] sm:$0xff] }
 0x29d   : > { %v831_v12 = vpop.f32.mrf.mxu1 }
 0x29e   : > { %940 = vst [vmem:[#allocation3 + $0xd0] sm:$0xff] %v908_v11  ;;  %v909_v14 = vadd.f32 %v831_v12, %v716_v10  ;;  %v737_v10 = vld [vmem:[#allocation3 + $0x28] sm:$0xff] }
 0x29f   : > { %v835_v15 = vpop.f32.mrf.mxu1 }
 0x2a0   : > { %941 = vst [vmem:[#allocation3 + $0xb0] sm:$0xff] %v909_v14  ;;  %v910_v17 = vadd.f32 %v835_v15, %v717_v13  ;;  %v738_v13 = vld [vmem:[#allocation3 + $0x98] sm:$0xff] }
 0x2a1   : > { %v837_v18 = vpop.f32.mrf.mxu1 }
 0x2a2   : > { %942 = vst [vmem:[#allocation3 + $0x38] sm:$0xff] %v910_v17  ;;  %v911_v20 = vadd.f32 %v837_v18, %v718_v16 }
 0x2a3   : > { %v841_v21 = vpop.f32.mrf.mxu1 }
 0x2a4   : > { %943 = vst [vmem:[#allocation3 + $0x40] sm:$0xff] %v911_v20  ;;  %v912_v23 = vadd.f32 %v841_v21, %v719_v19 }
 0x2a5   : > { %v843_v24 = vpop.f32.mrf.mxu1 }
 0x2a6   : > { %944 = vst [vmem:[#allocation3 + $0xe0] sm:$0xff] %v912_v23  ;;  %v913_v26 = vadd.f32 %v843_v24, %v720_v22 }
 0x2a7   : > { %v847_v27 = vpop.f32.mrf.mxu1 }
 0x2a8   : > { %945 = vst [vmem:[#allocation3 + $0x60] sm:$0xff] %v913_v26  ;;  %v914_v29 = vadd.f32 %v847_v27, %v721_v25 }
 0x2a9   : > { %v849_v30 = vpop.f32.mrf.mxu1 }
 0x2aa   : > { %946 = vst [vmem:[#allocation3 + $0x18] sm:$0xff] %v914_v29  ;;  %v915_v32 = vadd.f32 %v849_v30, %v722_v28 }
 0x2ab   : > { %v853_v33 = vpop.f32.mrf.mxu1 }
 0x2ac   : > { %947 = vst [vmem:[#allocation3 + $0x68] sm:$0xff] %v915_v32  ;;  %v916_v35 = vadd.f32 %v853_v33, %v723_v31 }
 0x2ad   : > { %v855_v36 = vpop.f32.mrf.mxu1 }
 0x2ae   : > { %948 = vst [vmem:[#allocation3 + $0x10] sm:$0xff] %v916_v35  ;;  %v917_v38 = vadd.f32 %v855_v36, %v724_v34 }
 0x2af   : > { %v859_v39 = vpop.f32.mrf.mxu1 }
 0x2b0   : > { %949 = vst [vmem:[#allocation3 + $0x70] sm:$0xff] %v917_v38  ;;  %v918_v41 = vadd.f32 %v859_v39, %v725_v37 }
 0x2b1   : > { %v861_v42 = vpop.f32.mrf.mxu1 }
 0x2b2   : > { %950 = vst [vmem:[#allocation3 + $0x50] sm:$0xff] %v918_v41  ;;  %v919_v44 = vadd.f32 %v861_v42, %v726_v40 }
 0x2b3   : > { %v865_v45 = vpop.f32.mrf.mxu1 }
 0x2b4   : > { %951 = vst [vmem:[#allocation3 + $0xa0] sm:$0xff] %v919_v44  ;;  %v920_v47 = vadd.f32 %v865_v45, %v727_v43 }
 0x2b5   : > { %v867_v48 = vpop.f32.mrf.mxu1 }
 0x2b6   : > { %952 = vst [vmem:[#allocation3 + $0xd8] sm:$0xff] %v920_v47  ;;  %v921_v50 = vadd.f32 %v867_v48, %v728_v46 }
 0x2b7   : > { %v871_v51 = vpop.f32.mrf.mxu1 }
 0x2b8   : > { %953 = vst [vmem:[#allocation3 + $0x30] sm:$0xff] %v921_v50  ;;  %v922_v53 = vadd.f32 %v871_v51, %v729_v49 }
 0x2b9   : > { %v873_v54 = vpop.f32.mrf.mxu1 }
 0x2ba   : > { %954 = vst [vmem:[#allocation3 + $0x20] sm:$0xff] %v922_v53  ;;  %v923_v56 = vadd.f32 %v873_v54, %v730_v52 }
 0x2bb   : > { %v877_v57 = vpop.f32.mrf.mxu1 }
 0x2bc   : > { %955 = vst [vmem:[#allocation3 + $0xf0] sm:$0xff] %v923_v56  ;;  %v924_v59 = vadd.f32 %v877_v57, %v731_v55 }
 0x2bd   : > { %v879_v60 = vpop.f32.mrf.mxu1 }
 0x2be   : > { %956 = vst [vmem:[#allocation3 + $0x88] sm:$0xff] %v924_v59  ;;  %v925_v62 = vadd.f32 %v879_v60, %v732_v58 }
 0x2bf   : > { %v883_v63 = vpop.f32.mrf.mxu1 }
 0x2c0   : > { %957 = vst [vmem:[#allocation3 + $0x48] sm:$0xff] %v925_v62  ;;  %v926_v1 = vadd.f32 %v883_v63, %v733_v61 }
 0x2c1   : > { %v885_v2 = vpop.f32.mrf.mxu1 }
 0x2c2   : > { %958 = vst [vmem:[#allocation3 + $0xf8] sm:$0xff] %v926_v1  ;;  %v927_v4 = vadd.f32 %v885_v2, %v734_v0 }
 0x2c3   : > { %v889_v5 = vpop.f32.mrf.mxu1 }
 0x2c4   : > { %959 = vst [vmem:[#allocation3 + $0xc0] sm:$0xff] %v927_v4  ;;  %v928_v8 = vadd.f32 %v889_v5, %v735_v3 }
 0x2c5   : > { %v891_v9 = vpop.f32.mrf.mxu1 }
 0x2c6   : > { %960 = vst [vmem:[#allocation3 + $0xb8] sm:$0xff] %v928_v8  ;;  %v929_v11 = vadd.f32 %v891_v9, %v736_v6 }
 0x2c7   : > { %v895_v12 = vpop.f32.mrf.mxu1 }
 0x2c8   : > { %961 = vst [vmem:[#allocation3] sm:$0xff] %v929_v11  ;;  %v930_v14 = vadd.f32 %v895_v12, %v737_v10  ;;  %1161 = sbr.rel (%p2133_p10) target bundleno = 1183 (0x49f), region = 56 }
 0x2c9   : > { %v897_v15 = vpop.f32.mrf.mxu1 }
 0x2ca   : > { %962 = vst [vmem:[#allocation3 + $0x28] sm:$0xff] %v930_v14  ;;  %v931_v16 = vadd.f32 %v897_v15, %v738_v13 }
 0x2cc   : > { %963 = vst [vmem:[#allocation3 + $0x98] sm:$0xff] %v931_v16 }
 0x2cd   : > { %v1162_v17 = vld [vmem:[#allocation4] sm:$0xff]  ;;  %v1164_v18 = vld [vmem:[#allocation4 + $0x10] sm:$0xff]  ;;  %v1165_v19 = vld [vmem:[#allocation4 + $0x18] sm:$0xff]  ;;  %v2458_v20 = vmov 0   ;;  %vm1959_vm4 = vcmp.eq.s32.totalorder %v2748_v7, 2  ;;  %vm1958_vm5 = vcmp.eq.s32.totalorder %v2748_v7, 1 }
 0x2ce   : > { %2262 = vset.pattern.permute.xlu1 %v2458_v20  ;;  %v1178_v21 = vmax.f32 %v1162_v17, 1.0  ;;  %2261 = vset.pattern.permute.xlu0 %v2458_v20  ;;  %v1180_v22 = vmax.f32 %v1164_v18, 1.0  ;;  %v1181_v23 = vmax.f32 %v1165_v19, 1.0  ;;  %v1163_v24 = vld [vmem:[#allocation4 + $0x8] sm:$0xff]  ;;  %v1166_v26 = vld [vmem:[#allocation4 + $0x20] sm:$0xff]  ;;  %v1168_v30 = vld [vmem:[#allocation4 + $0x30] sm:$0xff] }
 0x2cf   : > { %1596 = vperm.xlu1 %2262, %v1162_v17   ;;  %v1179_v25 = vmax.f32 %v1163_v24, 1.0  ;;  %v1182_v27 = vmax.f32 %v1166_v26, 1.0  ;;  %v1167_v28 = vld [vmem:[#allocation4 + $0x28] sm:$0xff]  ;;  %v1184_v31 = vmax.f32 %v1168_v30, 1.0  ;;  %v1169_v32 = vld [vmem:[#allocation4 + $0x38] sm:$0xff]  ;;  %v1170_v38 = vld [vmem:[#allocation4 + $0x40] sm:$0xff] }
 0x2d0   : > { %2263 = vrcp.f32 %v1178_v21  ;;  %v1183_v29 = vmax.f32 %v1167_v28, 1.0  ;;  %v1185_v36 = vmax.f32 %v1169_v32, 1.0  ;;  %v1186_v39 = vmax.f32 %v1170_v38, 1.0  ;;  %v1171_v41 = vld [vmem:[#allocation4 + $0x48] sm:$0xff]  ;;  %v1172_v44 = vld [vmem:[#allocation4 + $0x50] sm:$0xff]  ;;  %v1173_v47 = vld [vmem:[#allocation4 + $0x58] sm:$0xff] }
 0x2d1   : > { %2265 = vrcp.f32 %v1180_v22  ;;  %v1187_v42 = vmax.f32 %v1171_v41, 1.0  ;;  %v1188_v45 = vmax.f32 %v1172_v44, 1.0  ;;  %v1189_v48 = vmax.f32 %v1173_v47, 1.0  ;;  %v1174_v50 = vld [vmem:[#allocation4 + $0x60] sm:$0xff]  ;;  %v1175_v53 = vld [vmem:[#allocation4 + $0x68] sm:$0xff]  ;;  %v1176_v56 = vld [vmem:[#allocation4 + $0x70] sm:$0xff] }
 0x2d2   : > { %2267 = vrcp.f32 %v1181_v23  ;;  %v1190_v51 = vmax.f32 %v1174_v50, 1.0  ;;  %v1191_v54 = vmax.f32 %v1175_v53, 1.0  ;;  %v1192_v57 = vmax.f32 %v1176_v56, 1.0  ;;  %v1177_v59 = vld [vmem:[#allocation4 + $0x78] sm:$0xff]  ;;  %v1226_v3 = vld [vmem:[#allocation2 + $0xb0] sm:$0xff]  ;;  %v1227_v4 = vld [vmem:[#allocation2] sm:$0xff] }
 0x2d3   : > { %2269 = vrcp.f32 %v1179_v25  ;;  %v1193_v60 = vmax.f32 %v1177_v59, 1.0  ;;  %v1370_v5 = vld [vmem:[#allocation3 + $0x80] sm:$0xff]  ;;  %v1371_v6 = vld [vmem:[#allocation3 + $0xc8] sm:$0xff]  ;;  %v1230_v8 = vld [vmem:[#allocation2 + $0x50] sm:$0xff]  ;;  %vm1957_vm6 = vcmp.eq.s32.totalorder %v2748_v7, 0 }
 0x2d4   : > { %2271 = vrcp.f32 %v1182_v27  ;;  %v1231_v10 = vld [vmem:[#allocation2 + $0x68] sm:$0xff]  ;;  %v1375_v12 = vld [vmem:[#allocation3 + $0x90] sm:$0xff]  ;;  %v1434_v16 = vld [vmem:[#allocation10] sm:$0xff] }
 0x2d5   : > { %2273 = vrcp.f32 %v1183_v29  ;;  %v1374_v11 = vld [vmem:[#allocation3 + $0x8] sm:$0xff]  ;;  %v1438_v21 = vld [vmem:[#allocation10 + $0x20] sm:$0xff] }
 0x2d6   : > { %2275 = vrcp.f32 %v1184_v31  ;;  %v1435_v17 = vld [vmem:[#allocation10 + $0x8] sm:$0xff] }
 0x2d7   : > { %2277 = vrcp.f32 %v1185_v36  ;;  %v1439_v25 = vld [vmem:[#allocation10 + $0x28] sm:$0xff] }
 0x2d8   : > { %2279 = vrcp.f32 %v1186_v39 }
 0x2d9   : > { %2281 = vrcp.f32 %v1187_v42 }
 0x2da   : > { %2283 = vrcp.f32 %v1188_v45 }
 0x2db   : > { %2285 = vrcp.f32 %v1189_v48 }
 0x2dc   : > { %2287 = vrcp.f32 %v1190_v51  ;;  %v1372_v51 = vld [vmem:[#allocation3 + $0xe8] sm:$0xff] }
 0x2dd   : > { %v2264_v33 = vpop.eup %2263  ;;  %2289 = vrcp.f32 %v1191_v54 }
 0x2de   : > { %v2266_v34 = vpop.eup %2265  ;;  %1260 = vperm.xlu0 %2261, %v2264_v33   ;;  %2291 = vrcp.f32 %v1192_v57 }
 0x2df   : > { %v2268_v35 = vpop.eup %2267  ;;  %1270 = vperm.xlu1 %2262, %v2266_v34   ;;  %2293 = vrcp.f32 %v1193_v60 }
 0x2e0   : > { %v2270_v37 = vpop.eup %2269 }
 0x2e1   : > { %v2272_v40 = vpop.eup %2271 }
 0x2e2   : > { %1265 = vperm.xlu0 %2261, %v2270_v37   ;;  %v2274_v43 = vpop.eup %2273 }
 0x2e3   : > { %1275 = vperm.xlu1 %2262, %v2268_v35   ;;  %v2276_v46 = vpop.eup %2275 }
 0x2e4   : > { %v2278_v49 = vpop.eup %2277 }
 0x2e5   : > { %v2280_v52 = vpop.eup %2279 }
 0x2e6   : > { %1601 = vperm.xlu0 %2261, %v1163_v24   ;;  %v2282_v55 = vpop.eup %2281 }
 0x2e7   : > { %1280 = vperm.xlu1 %2262, %v2272_v40   ;;  %v2284_v58 = vpop.eup %2283 }
 0x2e8   : > { %v2286_v61 = vpop.eup %2285 }
 0x2e9   : > { %v2288_v62 = vpop.eup %2287 }
 0x2ea   : > { %1606 = vperm.xlu0 %2261, %v1164_v18   ;;  %v2290_v63 = vpop.eup %2289 }
 0x2eb   : > { %1285 = vperm.xlu1 %2262, %v2274_v43   ;;  %v2292_v0 = vpop.eup %2291  ;;  %v1232_v43 = vld [vmem:[#allocation2 + $0x30] sm:$0xff] }
 0x2ec   : > { %v2294_v1 = vpop.eup %2293 }
 0x2ee   : > { %1611 = vperm.xlu0 %2261, %v1165_v19  }
 0x2ef   : > { %1290 = vperm.xlu1 %2262, %v2276_v46  }
 0x2f2   : > { %1616 = vperm.xlu0 %2261, %v1166_v26  }
 0x2f3   : > { %1295 = vperm.xlu1 %2262, %v2278_v49  }
 0x2f6   : > { %1621 = vperm.xlu0 %2261, %v1167_v28  }
 0x2f7   : > { %1300 = vperm.xlu1 %2262, %v2280_v52  }
 0x2fa   : > { %1626 = vperm.xlu0 %2261, %v1168_v30  }
 0x2fb   : > { %1305 = vperm.xlu1 %2262, %v2282_v55   ;;  %v1376_v55 = vld [vmem:[#allocation3 + $0x58] sm:$0xff] }
 0x2fe   : > { %1631 = vperm.xlu0 %2261, %v1169_v32  }
 0x2ff   : > { %1310 = vperm.xlu1 %2262, %v2284_v58  }
 0x302   : > { %1636 = vperm.xlu0 %2261, %v1170_v38   ;;  %v1228_v38 = vld [vmem:[#allocation2 + $0xd8] sm:$0xff] }
 0x303   : > { %1315 = vperm.xlu1 %2262, %v2286_v61  }
 0x306   : > { %1641 = vperm.xlu0 %2261, %v1171_v41  }
 0x307   : > { %1320 = vperm.xlu1 %2262, %v2288_v62   ;;  %v1373_v62 = vld [vmem:[#allocation3 + $0x78] sm:$0xff] }
 0x30a   : > { %1646 = vperm.xlu0 %2261, %v1172_v44   ;;  %v1233_v44 = vld [vmem:[#allocation2 + $0x48] sm:$0xff] }
 0x30b   : > { %1325 = vperm.xlu1 %2262, %v2290_v63   ;;  %v1436_v63 = vld [vmem:[#allocation10 + $0x10] sm:$0xff] }
 0x30e   : > { %1651 = vperm.xlu0 %2261, %v1173_v47  }
 0x30f   : > { %1330 = vperm.xlu1 %2262, %v2292_v0   ;;  %v1437_v0 = vld [vmem:[#allocation10 + $0x18] sm:$0xff] }
 0x312   : > { %1656 = vperm.xlu0 %2261, %v1174_v50   ;;  %v1229_v50 = vld [vmem:[#allocation2 + $0x18] sm:$0xff] }
 0x313   : > { %1335 = vperm.xlu1 %2262, %v2294_v1  }
 0x316   : > { %1661 = vperm.xlu0 %2261, %v1175_v53  }
 0x317   : > { %1671 = vperm.xlu1 %2262, %v1177_v59  }
 0x31a   : > { %1666 = vperm.xlu0 %2261, %v1176_v56   ;;  %v1377_v56 = vld [vmem:[#allocation3 + $0xa8] sm:$0xff] }
 0x34a   : > { %v2851_v2 = vpop.permute.xlu1 %1596 }
 0x359   : > { %v1261_v9 = vpop.permute.xlu0 %1260 }
 0x35a   : > { %v1338_v13 = vmul.f32 %v1261_v9, %v1226_v3  ;;  %v1339_v14 = vmul.f32 %v1261_v9, %v1227_v4  ;;  %v1271_v15 = vpop.permute.xlu1 %1270  ;;  %v1402_v18 = vmul.f32 %v1370_v5, %v1261_v9  ;;  %v1403_v19 = vmul.f32 %v1371_v6, %v1261_v9  ;;  %v1440_v4 = vld [vmem:[#allocation10 + $0x30] sm:$0xff]  ;;  %v1441_v5 = vld [vmem:[#allocation10 + $0x38] sm:$0xff] }
 0x35b   : > { %v1342_v20 = vmul.f32 %v1271_v15, %v1230_v8  ;;  %v1343_v22 = vmul.f32 %v1271_v15, %v1231_v10  ;;  %v1406_v23 = vmul.f32 %v1374_v11, %v1271_v15  ;;  %v1407_v24 = vmul.f32 %v1375_v12, %v1271_v15 }
 0x35c   : > { %v1466_v26 = vsub.f32 %v1338_v13, %v1434_v16  ;;  %v1467_v27 = vsub.f32 %v1339_v14, %v1435_v17  ;;  %v1498_v28 = vsub.f32 %v1402_v18, %v1434_v16  ;;  %v1499_v29 = vsub.f32 %v1403_v19, %v1435_v17 }
 0x35d   : > { %v1470_v30 = vsub.f32 %v1342_v20, %v1438_v21  ;;  %v1530_v31 = vsub.f32 %v1338_v13, %v1402_v18  ;;  %v1531_v32 = vsub.f32 %v1339_v14, %v1403_v19  ;;  %v1471_v33 = vsub.f32 %v1343_v22, %v1439_v25  ;;  %v1266_v39 = vpop.permute.xlu0 %1265 }
 0x35e   : > { %v1502_v34 = vsub.f32 %v1406_v23, %v1438_v21  ;;  %v1503_v35 = vsub.f32 %v1407_v24, %v1439_v25  ;;  %v1562_v36 = vmul.f32 %v1466_v26, %v1466_v26  ;;  %v1563_v37 = vmul.f32 %v1467_v27, %v1467_v27  ;;  %v1276_v45 = vpop.permute.xlu1 %1275 }
 0x35f   : > { %v1534_v40 = vsub.f32 %v1342_v20, %v1406_v23  ;;  %v1747_v41 = vmul.f32 %v1498_v28, %v1498_v28  ;;  %v1748_v42 = vmul.f32 %v1499_v29, %v1499_v29  ;;  %v1535_v46 = vsub.f32 %v1343_v22, %v1407_v24  ;;  %v1234_v28 = vld [vmem:[#allocation2 + $0x80] sm:$0xff]  ;;  %v1235_v29 = vld [vmem:[#allocation2 + $0x88] sm:$0xff] }
 0x360   : > { %v2853_v47 = vmul.f32 %v1470_v30, %v1470_v30  ;;  %v1852_v48 = vmul.f32 %v1530_v31, %v1530_v31  ;;  %v1853_v49 = vmul.f32 %v1531_v32, %v1531_v32  ;;  %v2855_v52 = vmul.f32 %v1471_v33, %v1471_v33  ;;  %v1378_v30 = vld [vmem:[#allocation3 + $0xd0] sm:$0xff] }
 0x361   : > { %v2857_v53 = vmul.f32 %v1502_v34, %v1502_v34  ;;  %v2859_v54 = vmul.f32 %v1503_v35, %v1503_v35  ;;  %v1340_v57 = vmul.f32 %v1266_v39, %v1228_v38  ;;  %v1674_v58 = vmul.f32 %v2851_v2, %v1562_v36  ;;  %v1602_v32 = vpop.permute.xlu0 %1601 }
 0x362   : > { %v1675_v59 = vmul.f32 %v2851_v2, %v1563_v37  ;;  %v1344_v60 = vmul.f32 %v1276_v45, %v1232_v43  ;;  %v1345_v61 = vmul.f32 %v1276_v45, %v1233_v44  ;;  %v1779_v1 = vmul.f32 %v1747_v41, %v2851_v2  ;;  %v1281_v31 = vpop.permute.xlu1 %1280  ;;  %v1379_v37 = vld [vmem:[#allocation3 + $0xb0] sm:$0xff] }
 0x363   : > { %v1780_v3 = vmul.f32 %v1748_v42, %v2851_v2  ;;  %v1341_v6 = vmul.f32 %v1266_v39, %v1229_v50  ;;  %v1404_v8 = vmul.f32 %v1372_v51, %v1266_v39  ;;  %v1884_v9 = vmul.f32 %v1852_v48, %v2851_v2  ;;  %v1443_v50 = vld [vmem:[#allocation10 + $0x48] sm:$0xff] }
 0x364   : > { %v1885_v10 = vmul.f32 %v1853_v49, %v2851_v2  ;;  %v1408_v11 = vmul.f32 %v1376_v55, %v1276_v45  ;;  %v1409_v12 = vmul.f32 %v1377_v56, %v1276_v45  ;;  %v1405_v13 = vmul.f32 %v1373_v62, %v1266_v39  ;;  %v1442_v49 = vld [vmem:[#allocation10 + $0x40] sm:$0xff] }
 0x365   : > { %v1468_v14 = vsub.f32 %v1340_v57, %v1436_v63  ;;  %v1469_v15 = vsub.f32 %v1341_v6, %v1437_v0  ;;  %v1500_v16 = vsub.f32 %v1404_v8, %v1436_v63  ;;  %v2867_v17 = vmul.f32 %v1534_v40, %v1534_v40 }
 0x366   : > { %v1472_v18 = vsub.f32 %v1344_v60, %v1440_v4  ;;  %v1473_v19 = vsub.f32 %v1345_v61, %v1441_v5  ;;  %v1532_v20 = vsub.f32 %v1340_v57, %v1404_v8  ;;  %v2869_v21 = vmul.f32 %v1535_v46, %v1535_v46 }
 0x367   : > { %v1706_v22 = vadd.f32 %v1675_v59, %v1674_v58  ;;  %v1811_v23 = vadd.f32 %v1780_v3, %v1779_v1  ;;  %v1564_v24 = vmul.f32 %v1468_v14, %v1468_v14  ;;  %v1916_v25 = vadd.f32 %v1885_v10, %v1884_v9  ;;  %v1237_v1 = vld [vmem:[#allocation2 + $0xb8] sm:$0xff]  ;;  %v1286_v3 = vpop.permute.xlu1 %1285 }
 0x368   : > { %v1501_v26 = vsub.f32 %v1405_v13, %v1437_v0  ;;  %v1533_v27 = vsub.f32 %v1341_v6, %v1405_v13  ;;  %v1749_v2 = vmul.f32 %v1500_v16, %v1500_v16  ;;  %v1504_v33 = vsub.f32 %v1408_v11, %v1440_v4  ;;  %v1236_v0 = vld [vmem:[#allocation2 + $0xe8] sm:$0xff]  ;;  %v1607_v4 = vpop.permute.xlu0 %1606  ;;  %v1380_v10 = vld [vmem:[#allocation3 + $0x38] sm:$0xff] }
 0x369   : > { %v1505_v34 = vsub.f32 %v1409_v12, %v1441_v5  ;;  %v1565_v35 = vmul.f32 %v1469_v15, %v1469_v15  ;;  %v1854_v36 = vmul.f32 %v1532_v20, %v1532_v20  ;;  %v1536_v38 = vsub.f32 %v1344_v60, %v1408_v11  ;;  %v1381_v15 = vld [vmem:[#allocation3 + $0x40] sm:$0xff] }
 0x36a   : > { %v1537_v39 = vsub.f32 %v1345_v61, %v1409_v12  ;;  %v2871_v40 = vmul.f32 %v1472_v18, %v1472_v18  ;;  %v2873_v41 = vmul.f32 %v1473_v19, %v1473_v19  ;;  %v1346_v42 = vmul.f32 %v1281_v31, %v1234_v28 }
 0x36b   : > { %v1347_v43 = vmul.f32 %v1281_v31, %v1235_v29  ;;  %v1410_v44 = vmul.f32 %v1378_v30, %v1281_v31  ;;  %v1676_v45 = vmul.f32 %v1602_v32, %v1564_v24  ;;  %v1750_v46 = vmul.f32 %v1501_v26, %v1501_v26  ;;  %v1444_v26 = vld [vmem:[#allocation10 + $0x50] sm:$0xff] }
 0x36c   : > { %v1855_v48 = vmul.f32 %v1533_v27, %v1533_v27  ;;  %v1411_v51 = vmul.f32 %v1379_v37, %v1281_v31  ;;  %v1781_v55 = vmul.f32 %v1749_v2, %v1602_v32  ;;  %v2875_v56 = vmul.f32 %v1504_v33, %v1504_v33  ;;  %v1445_v27 = vld [vmem:[#allocation10 + $0x58] sm:$0xff] }
 0x36d   : > { %v1677_v57 = vmul.f32 %v1602_v32, %v1565_v35  ;;  %v1707_v58 = vadd.f32 %v1706_v22, %v1676_v45  ;;  %v1886_v59 = vmul.f32 %v1854_v36, %v1602_v32  ;;  %v2877_v60 = vmul.f32 %v1505_v34, %v1505_v34 }
 0x36e   : > { %v2879_v61 = vmul.f32 %v1536_v38, %v1536_v38  ;;  %v2881_v62 = vmul.f32 %v1537_v39, %v1537_v39  ;;  %v1812_v63 = vadd.f32 %v1811_v23, %v1781_v55  ;;  %v1474_v5 = vsub.f32 %v1346_v42, %v1442_v49  ;;  %v1238_v38 = vld [vmem:[#allocation2 + $0x60] sm:$0xff]  ;;  %v1239_v39 = vld [vmem:[#allocation2 + $0xf0] sm:$0xff] }
 0x36f   : > { %v1475_v6 = vsub.f32 %v1347_v43, %v1443_v50  ;;  %v1708_v8 = vadd.f32 %v1707_v58, %v1677_v57  ;;  %v1917_v9 = vadd.f32 %v1916_v25, %v1886_v59  ;;  %v1506_v11 = vsub.f32 %v1410_v44, %v1442_v49  ;;  %v1382_v49 = vld [vmem:[#allocation3 + $0xe0] sm:$0xff] }
 0x370   : > { %v1507_v12 = vsub.f32 %v1411_v51, %v1443_v50  ;;  %v1782_v13 = vmul.f32 %v1750_v46, %v1602_v32  ;;  %v1887_v14 = vmul.f32 %v1855_v48, %v1602_v32  ;;  %v1538_v16 = vsub.f32 %v1346_v42, %v1410_v44  ;;  %v1291_v42 = vpop.permute.xlu1 %1290  ;;  %v1383_v55 = vld [vmem:[#allocation3 + $0x60] sm:$0xff] }
 0x371   : > { %v1348_v18 = vmul.f32 %v1286_v3, %v1236_v0  ;;  %v1349_v19 = vmul.f32 %v1286_v3, %v1237_v1  ;;  %v1678_v20 = vmul.f32 %v1607_v4, %v2853_v47  ;;  %v1539_v22 = vsub.f32 %v1347_v43, %v1411_v51  ;;  %v1612_v43 = vpop.permute.xlu0 %1611 }
 0x372   : > { %v1813_v23 = vadd.f32 %v1812_v63, %v1782_v13  ;;  %v1918_v24 = vadd.f32 %v1917_v9, %v1887_v14  ;;  %v1412_v2 = vmul.f32 %v1380_v10, %v1286_v3  ;;  %v2884_v28 = vmul.f32 %v1474_v5, %v1474_v5  ;;  %v1447_v5 = vld [vmem:[#allocation10 + $0x68] sm:$0xff] }
 0x373   : > { %v2886_v25 = vmul.f32 %v1475_v6, %v1475_v6  ;;  %v1413_v29 = vmul.f32 %v1381_v15, %v1286_v3  ;;  %v1709_v30 = vadd.f32 %v1708_v8, %v1678_v20  ;;  %v2888_v31 = vmul.f32 %v1506_v11, %v1506_v11  ;;  %v1446_v3 = vld [vmem:[#allocation10 + $0x60] sm:$0xff] }
 0x374   : > { %v1679_v32 = vmul.f32 %v1607_v4, %v2855_v52  ;;  %v1783_v33 = vmul.f32 %v2857_v53, %v1607_v4  ;;  %v1888_v47 = vmul.f32 %v2867_v17, %v1607_v4  ;;  %v2893_v34 = vmul.f32 %v1507_v12, %v1507_v12 }
 0x375   : > { %v2895_v35 = vmul.f32 %v1538_v16, %v1538_v16  ;;  %v1476_v36 = vsub.f32 %v1348_v18, %v1444_v26  ;;  %v1477_v37 = vsub.f32 %v1349_v19, %v1445_v27  ;;  %v1508_v44 = vsub.f32 %v1412_v2, %v1444_v26  ;;  %v1240_v16 = vld [vmem:[#allocation2 + $0x8] sm:$0xff]  ;;  %v1617_v20 = vpop.permute.xlu0 %1616 }
 0x376   : > { %v1710_v45 = vadd.f32 %v1709_v30, %v1679_v32  ;;  %v1814_v46 = vadd.f32 %v1813_v23, %v1783_v33  ;;  %v1919_v48 = vadd.f32 %v1918_v24, %v1888_v47  ;;  %v2897_v52 = vmul.f32 %v1539_v22, %v1539_v22  ;;  %v1385_v30 = vld [vmem:[#allocation3 + $0x68] sm:$0xff] }
 0x377   : > { %v1509_v53 = vsub.f32 %v1413_v29, %v1445_v27  ;;  %v1784_v17 = vmul.f32 %v2859_v54, %v1607_v4  ;;  %v1889_v50 = vmul.f32 %v2869_v21, %v1607_v4  ;;  %v1540_v51 = vsub.f32 %v1348_v18, %v1412_v2  ;;  %v1241_v18 = vld [vmem:[#allocation2 + $0x78] sm:$0xff] }
 0x378   : > { %v1350_v57 = vmul.f32 %v1291_v42, %v1238_v38  ;;  %v1351_v58 = vmul.f32 %v1291_v42, %v1239_v39  ;;  %v1680_v59 = vmul.f32 %v1612_v43, %v2871_v40  ;;  %v1541_v63 = vsub.f32 %v1349_v19, %v1413_v29  ;;  %v1296_v19 = vpop.permute.xlu1 %1295  ;;  %v1384_v27 = vld [vmem:[#allocation3 + $0x18] sm:$0xff]  ;;  %v1448_v39 = vld [vmem:[#allocation10 + $0x70] sm:$0xff] }
 0x379   : > { %v1815_v0 = vadd.f32 %v1814_v46, %v1784_v17  ;;  %v1920_v1 = vadd.f32 %v1919_v48, %v1889_v50  ;;  %v1414_v6 = vmul.f32 %v1382_v49, %v1291_v42  ;;  %v2902_v8 = vmul.f32 %v1476_v36, %v1476_v36 }
 0x37a   : > { %v2904_v9 = vmul.f32 %v1477_v37, %v1477_v37  ;;  %v2906_v10 = vmul.f32 %v1508_v44, %v1508_v44  ;;  %v1711_v54 = vadd.f32 %v1710_v45, %v1680_v59  ;;  %v1415_v21 = vmul.f32 %v1383_v55, %v1291_v42  ;;  %v1449_v42 = vld [vmem:[#allocation10 + $0x78] sm:$0xff]  ;;  %v1622_v59 = vpop.permute.xlu0 %1621 }
 0x37b   : > { %v1681_v4 = vmul.f32 %v1612_v43, %v2873_v41  ;;  %v1785_v11 = vmul.f32 %v2875_v56, %v1612_v43  ;;  %v1890_v40 = vmul.f32 %v2879_v61, %v1612_v43  ;;  %v2911_v12 = vmul.f32 %v1509_v53, %v1509_v53  ;;  %v1242_v55 = vld [vmem:[#allocation2 + $0x38] sm:$0xff] }
 0x37c   : > { %v2913_v13 = vmul.f32 %v1540_v51, %v1540_v51  ;;  %v1478_v14 = vsub.f32 %v1350_v57, %v1446_v3  ;;  %v1479_v15 = vsub.f32 %v1351_v58, %v1447_v5  ;;  %v1510_v22 = vsub.f32 %v1414_v6, %v1446_v3 }
 0x37d   : > { %v1712_v23 = vadd.f32 %v1711_v54, %v1681_v4  ;;  %v1816_v24 = vadd.f32 %v1815_v0, %v1785_v11  ;;  %v1921_v26 = vadd.f32 %v1920_v1, %v1890_v40  ;;  %v2915_v41 = vmul.f32 %v1541_v63, %v1541_v63 }
 0x37e   : > { %v1542_v56 = vsub.f32 %v1350_v57, %v1414_v6  ;;  %v1786_v61 = vmul.f32 %v2877_v60, %v1612_v43  ;;  %v1891_v2 = vmul.f32 %v2881_v62, %v1612_v43  ;;  %v1511_v29 = vsub.f32 %v1415_v21, %v1447_v5  ;;  %v1243_v57 = vld [vmem:[#allocation2 + $0x58] sm:$0xff]  ;;  %v1386_v5 = vld [vmem:[#allocation3 + $0x10] sm:$0xff] }
 0x37f   : > { %v1352_v32 = vmul.f32 %v1296_v19, %v1240_v16  ;;  %v1353_v33 = vmul.f32 %v1296_v19, %v1241_v18  ;;  %v1682_v47 = vmul.f32 %v1617_v20, %v2884_v28  ;;  %v1543_v36 = vsub.f32 %v1351_v58, %v1415_v21  ;;  %v1301_v58 = vpop.permute.xlu1 %1300  ;;  %v1387_v21 = vld [vmem:[#allocation3 + $0x70] sm:$0xff]  ;;  %v1450_v18 = vld [vmem:[#allocation10 + $0x80] sm:$0xff] }
 0x380   : > { %v1817_v37 = vadd.f32 %v1816_v24, %v1786_v61  ;;  %v1922_v38 = vadd.f32 %v1921_v26, %v1891_v2  ;;  %v1416_v44 = vmul.f32 %v1384_v27, %v1296_v19  ;;  %v2920_v45 = vmul.f32 %v1478_v14, %v1478_v14 }
 0x381   : > { %v2922_v46 = vmul.f32 %v1479_v15, %v1479_v15  ;;  %v2924_v48 = vmul.f32 %v1510_v22, %v1510_v22  ;;  %v1713_v60 = vadd.f32 %v1712_v23, %v1682_v47  ;;  %v1417_v62 = vmul.f32 %v1385_v30, %v1296_v19  ;;  %v1451_v19 = vld [vmem:[#allocation10 + $0x88] sm:$0xff]  ;;  %v1244_v30 = vld [vmem:[#allocation2 + $0x40] sm:$0xff]  ;;  %v1627_v47 = vpop.permute.xlu0 %1626 }
 0x382   : > { %v1683_v43 = vmul.f32 %v1617_v20, %v2886_v25  ;;  %v1787_v49 = vmul.f32 %v2888_v31, %v1617_v20  ;;  %v1892_v28 = vmul.f32 %v2895_v35, %v1617_v20  ;;  %v2929_v53 = vmul.f32 %v1511_v29, %v1511_v29 }
 0x383   : > { %v2931_v17 = vmul.f32 %v1542_v56, %v1542_v56  ;;  %v1480_v50 = vsub.f32 %v1352_v32, %v1448_v39  ;;  %v1481_v51 = vsub.f32 %v1353_v33, %v1449_v42  ;;  %v1512_v63 = vsub.f32 %v1416_v44, %v1448_v39 }
 0x384   : > { %v1714_v0 = vadd.f32 %v1713_v60, %v1683_v43  ;;  %v1818_v1 = vadd.f32 %v1817_v37, %v1787_v49  ;;  %v1923_v3 = vadd.f32 %v1922_v38, %v1892_v28  ;;  %v2933_v25 = vmul.f32 %v1543_v36, %v1543_v36 }
 0x385   : > { %v1544_v31 = vsub.f32 %v1352_v32, %v1416_v44  ;;  %v1788_v35 = vmul.f32 %v2893_v34, %v1617_v20  ;;  %v1893_v6 = vmul.f32 %v2897_v52, %v1617_v20  ;;  %v1513_v54 = vsub.f32 %v1417_v62, %v1449_v42  ;;  %v1245_v32 = vld [vmem:[#allocation2 + $0xc8] sm:$0xff]  ;;  %v1388_v42 = vld [vmem:[#allocation3 + $0x50] sm:$0xff] }
 0x386   : > { %v1354_v4 = vmul.f32 %v1301_v58, %v1242_v55  ;;  %v1355_v11 = vmul.f32 %v1301_v58, %v1243_v57  ;;  %v1684_v40 = vmul.f32 %v1622_v59, %v2902_v8  ;;  %v1545_v14 = vsub.f32 %v1353_v33, %v1417_v62  ;;  %v1306_v33 = vpop.permute.xlu1 %1305  ;;  %v1389_v62 = vld [vmem:[#allocation3 + $0xa0] sm:$0xff]  ;;  %v1452_v57 = vld [vmem:[#allocation10 + $0x90] sm:$0xff] }
 0x387   : > { %v1819_v15 = vadd.f32 %v1818_v1, %v1788_v35  ;;  %v1924_v16 = vadd.f32 %v1923_v3, %v1893_v6  ;;  %v1418_v22 = vmul.f32 %v1386_v5, %v1301_v58  ;;  %v2938_v23 = vmul.f32 %v1480_v50, %v1480_v50 }
 0x388   : > { %v2940_v24 = vmul.f32 %v1481_v51, %v1481_v51  ;;  %v2942_v26 = vmul.f32 %v1512_v63, %v1512_v63  ;;  %v1715_v34 = vadd.f32 %v1714_v0, %v1684_v40  ;;  %v1419_v52 = vmul.f32 %v1387_v21, %v1301_v58  ;;  %v1453_v58 = vld [vmem:[#allocation10 + $0x98] sm:$0xff]  ;;  %v1246_v21 = vld [vmem:[#allocation2 + $0xe0] sm:$0xff]  ;;  %v1632_v40 = vpop.permute.xlu0 %1631 }
 0x389   : > { %v1685_v20 = vmul.f32 %v1622_v59, %v2904_v9  ;;  %v1789_v27 = vmul.f32 %v2906_v10, %v1622_v59  ;;  %v1894_v8 = vmul.f32 %v2913_v13, %v1622_v59  ;;  %v2947_v56 = vmul.f32 %v1513_v54, %v1513_v54 }
 0x38a   : > { %v2949_v61 = vmul.f32 %v1544_v31, %v1544_v31  ;;  %v1482_v2 = vsub.f32 %v1354_v4, %v1450_v18  ;;  %v1483_v29 = vsub.f32 %v1355_v11, %v1451_v19  ;;  %v1514_v36 = vsub.f32 %v1418_v22, %v1450_v18 }
 0x38b   : > { %v1716_v37 = vadd.f32 %v1715_v34, %v1685_v20  ;;  %v1820_v38 = vadd.f32 %v1819_v15, %v1789_v27  ;;  %v1925_v39 = vadd.f32 %v1924_v16, %v1894_v8  ;;  %v2951_v9 = vmul.f32 %v1545_v14, %v1545_v14 }
 0x38c   : > { %v1546_v10 = vsub.f32 %v1354_v4, %v1418_v22  ;;  %v1790_v13 = vmul.f32 %v2911_v12, %v1622_v59  ;;  %v1895_v44 = vmul.f32 %v2915_v41, %v1622_v59  ;;  %v1515_v60 = vsub.f32 %v1419_v52, %v1451_v19  ;;  %v1247_v4 = vld [vmem:[#allocation2 + $0x90] sm:$0xff]  ;;  %v1390_v19 = vld [vmem:[#allocation3 + $0xd8] sm:$0xff] }
 0x38d   : > { %v1356_v43 = vmul.f32 %v1306_v33, %v1244_v30  ;;  %v1357_v49 = vmul.f32 %v1306_v33, %v1245_v32  ;;  %v1686_v28 = vmul.f32 %v1627_v47, %v2920_v45  ;;  %v1547_v50 = vsub.f32 %v1355_v11, %v1419_v52  ;;  %v1311_v11 = vpop.permute.xlu1 %1310  ;;  %v1391_v52 = vld [vmem:[#allocation3 + $0x30] sm:$0xff]  ;;  %v1454_v32 = vld [vmem:[#allocation10 + $0xa0] sm:$0xff] }
 0x38e   : > { %v1821_v51 = vadd.f32 %v1820_v38, %v1790_v13  ;;  %v1926_v55 = vadd.f32 %v1925_v39, %v1895_v44  ;;  %v1420_v63 = vmul.f32 %v1388_v42, %v1306_v33  ;;  %v2956_v0 = vmul.f32 %v1482_v2, %v1482_v2 }
 0x38f   : > { %v2958_v1 = vmul.f32 %v1483_v29, %v1483_v29  ;;  %v2960_v3 = vmul.f32 %v1514_v36, %v1514_v36  ;;  %v1717_v12 = vadd.f32 %v1716_v37, %v1686_v28  ;;  %v1421_v41 = vmul.f32 %v1389_v62, %v1306_v33  ;;  %v1455_v33 = vld [vmem:[#allocation10 + $0xa8] sm:$0xff]  ;;  %v1248_v62 = vld [vmem:[#allocation2 + $0x70] sm:$0xff]  ;;  %v1637_v28 = vpop.permute.xlu0 %1636 }
 0x390   : > { %v1687_v59 = vmul.f32 %v1627_v47, %v2922_v46  ;;  %v1791_v5 = vmul.f32 %v2924_v48, %v1627_v47  ;;  %v1896_v45 = vmul.f32 %v2931_v17, %v1627_v47  ;;  %v2965_v31 = vmul.f32 %v1515_v60, %v1515_v60 }
 0x391   : > { %v2967_v35 = vmul.f32 %v1546_v10, %v1546_v10  ;;  %v1484_v6 = vsub.f32 %v1356_v43, %v1452_v57  ;;  %v1485_v54 = vsub.f32 %v1357_v49, %v1453_v58  ;;  %v1516_v14 = vsub.f32 %v1420_v63, %v1452_v57 }
 0x392   : > { %v1718_v15 = vadd.f32 %v1717_v12, %v1687_v59  ;;  %v1822_v16 = vadd.f32 %v1821_v51, %v1791_v5  ;;  %v1927_v18 = vadd.f32 %v1926_v55, %v1896_v45  ;;  %v2969_v46 = vmul.f32 %v1547_v50, %v1547_v50 }
 0x393   : > { %v1548_v48 = vsub.f32 %v1356_v43, %v1420_v63  ;;  %v1792_v17 = vmul.f32 %v2929_v53, %v1627_v47  ;;  %v1897_v22 = vmul.f32 %v2933_v25, %v1627_v47  ;;  %v1517_v34 = vsub.f32 %v1421_v41, %v1453_v58  ;;  %v1249_v43 = vld [vmem:[#allocation2 + $0xc0] sm:$0xff] }
 0x394   : > { %v1358_v20 = vmul.f32 %v1311_v11, %v1246_v21  ;;  %v1359_v27 = vmul.f32 %v1311_v11, %v1247_v4  ;;  %v1688_v8 = vmul.f32 %v1632_v40, %v2938_v23  ;;  %v1549_v2 = vsub.f32 %v1357_v49, %v1421_v41  ;;  %v1316_v49 = vpop.permute.xlu1 %1315  ;;  %v1392_v58 = vld [vmem:[#allocation3 + $0x20] sm:$0xff]  ;;  %v1393_v41 = vld [vmem:[#allocation3 + $0xf0] sm:$0xff] }
 0x395   : > { %v1823_v29 = vadd.f32 %v1822_v16, %v1792_v17  ;;  %v1928_v30 = vadd.f32 %v1927_v18, %v1897_v22  ;;  %v1422_v36 = vmul.f32 %v1390_v19, %v1311_v11  ;;  %v2974_v37 = vmul.f32 %v1484_v6, %v1484_v6  ;;  %v1456_v4 = vld [vmem:[#allocation10 + $0xb0] sm:$0xff] }
 0x396   : > { %v2976_v38 = vmul.f32 %v1485_v54, %v1485_v54  ;;  %v2978_v39 = vmul.f32 %v1516_v14, %v1516_v14  ;;  %v1719_v53 = vadd.f32 %v1718_v15, %v1688_v8  ;;  %v1423_v25 = vmul.f32 %v1391_v52, %v1311_v11  ;;  %v1457_v11 = vld [vmem:[#allocation10 + $0xb8] sm:$0xff] }
 0x397   : > { %v1689_v47 = vmul.f32 %v1632_v40, %v2940_v24  ;;  %v1793_v42 = vmul.f32 %v2942_v26, %v1632_v40  ;;  %v1898_v23 = vmul.f32 %v2949_v61, %v1632_v40  ;;  %v2983_v10 = vmul.f32 %v1517_v34, %v1517_v34 }
 0x398   : > { %v2985_v13 = vmul.f32 %v1548_v48, %v1548_v48  ;;  %v1486_v44 = vsub.f32 %v1358_v20, %v1454_v32  ;;  %v1487_v60 = vsub.f32 %v1359_v27, %v1455_v33  ;;  %v1518_v50 = vsub.f32 %v1422_v36, %v1454_v32  ;;  %v1642_v48 = vpop.permute.xlu0 %1641  ;;  %v1251_v32 = vld [vmem:[#allocation2 + $0xd0] sm:$0xff] }
 0x399   : > { %v1720_v51 = vadd.f32 %v1719_v53, %v1689_v47  ;;  %v1824_v55 = vadd.f32 %v1823_v29, %v1793_v42  ;;  %v1929_v57 = vadd.f32 %v1928_v30, %v1898_v23  ;;  %v2987_v24 = vmul.f32 %v1549_v2, %v1549_v2  ;;  %v1395_v47 = vld [vmem:[#allocation3 + $0x48] sm:$0xff] }
 0x39a   : > { %v1550_v26 = vsub.f32 %v1358_v20, %v1422_v36  ;;  %v1794_v61 = vmul.f32 %v2947_v56, %v1632_v40  ;;  %v1899_v63 = vmul.f32 %v2951_v9, %v1632_v40  ;;  %v1519_v12 = vsub.f32 %v1423_v25, %v1455_v33  ;;  %v1250_v20 = vld [vmem:[#allocation2 + $0xa8] sm:$0xff] }
 0x39b   : > { %v1360_v59 = vmul.f32 %v1316_v49, %v1248_v62  ;;  %v1361_v5 = vmul.f32 %v1316_v49, %v1249_v43  ;;  %v1690_v45 = vmul.f32 %v1637_v28, %v2956_v0  ;;  %v1551_v6 = vsub.f32 %v1359_v27, %v1423_v25  ;;  %v1321_v27 = vpop.permute.xlu1 %1320  ;;  %v1394_v36 = vld [vmem:[#allocation3 + $0x88] sm:$0xff]  ;;  %v1458_v43 = vld [vmem:[#allocation10 + $0xc0] sm:$0xff] }
 0x39c   : > { %v1825_v54 = vadd.f32 %v1824_v55, %v1794_v61  ;;  %v1930_v21 = vadd.f32 %v1929_v57, %v1899_v63  ;;  %v1424_v14 = vmul.f32 %v1392_v58, %v1316_v49  ;;  %v2992_v15 = vmul.f32 %v1486_v44, %v1486_v44 }
 0x39d   : > { %v2994_v16 = vmul.f32 %v1487_v60, %v1487_v60  ;;  %v2996_v18 = vmul.f32 %v1518_v50, %v1518_v50  ;;  %v1721_v56 = vadd.f32 %v1720_v51, %v1690_v45  ;;  %v1425_v9 = vmul.f32 %v1393_v41, %v1316_v49 }
 0x39e   : > { %v1691_v40 = vmul.f32 %v1637_v28, %v2958_v1  ;;  %v1795_v19 = vmul.f32 %v2960_v3, %v1637_v28  ;;  %v1900_v0 = vmul.f32 %v2967_v35, %v1637_v28  ;;  %v3001_v17 = vmul.f32 %v1519_v12, %v1519_v12 }
 0x39f   : > { %v3003_v22 = vmul.f32 %v1550_v26, %v1550_v26  ;;  %v1488_v34 = vsub.f32 %v1360_v59, %v1456_v4  ;;  %v1489_v52 = vsub.f32 %v1361_v5, %v1457_v11  ;;  %v1520_v8 = vsub.f32 %v1424_v14, %v1456_v4  ;;  %v1326_v45 = vpop.permute.xlu1 %1325 }
 0x3a0   : > { %v1722_v2 = vadd.f32 %v1721_v56, %v1691_v40  ;;  %v1826_v29 = vadd.f32 %v1825_v54, %v1795_v19  ;;  %v1931_v30 = vadd.f32 %v1930_v21, %v1900_v0  ;;  %v3005_v33 = vmul.f32 %v1551_v6, %v1551_v6  ;;  %v1397_v56 = vld [vmem:[#allocation3 + $0xc0] sm:$0xff] }
 0x3a1   : > { %v1552_v1 = vsub.f32 %v1360_v59, %v1424_v14  ;;  %v1796_v3 = vmul.f32 %v2965_v31, %v1637_v28  ;;  %v1901_v35 = vmul.f32 %v2969_v46, %v1637_v28  ;;  %v1521_v53 = vsub.f32 %v1425_v9, %v1457_v11  ;;  %v1459_v31 = vld [vmem:[#allocation10 + $0xc8] sm:$0xff]  ;;  %v1647_v28 = vpop.permute.xlu0 %1646  ;;  %v1252_v59 = vld [vmem:[#allocation2 + $0x10] sm:$0xff]  ;;  %v1396_v11 = vld [vmem:[#allocation3 + $0xf8] sm:$0xff] }
 0x3a2   : > { %v1553_v25 = vsub.f32 %v1361_v5, %v1425_v9  ;;  %v1362_v42 = vmul.f32 %v1321_v27, %v1250_v20  ;;  %v1692_v23 = vmul.f32 %v1642_v48, %v2974_v37  ;;  %v3010_v44 = vmul.f32 %v1488_v34, %v1488_v34  ;;  %v1253_v5 = vld [vmem:[#allocation2 + $0x28] sm:$0xff] }
 0x3a3   : > { %v1827_v60 = vadd.f32 %v1826_v29, %v1796_v3  ;;  %v1932_v62 = vadd.f32 %v1931_v30, %v1901_v35  ;;  %v1363_v49 = vmul.f32 %v1321_v27, %v1251_v32  ;;  %v3012_v50 = vmul.f32 %v1489_v52, %v1489_v52 }
 0x3a4   : > { %v3014_v51 = vmul.f32 %v1520_v8, %v1520_v8  ;;  %v1426_v55 = vmul.f32 %v1394_v36, %v1321_v27  ;;  %v1723_v46 = vadd.f32 %v1722_v2, %v1692_v23  ;;  %v1427_v57 = vmul.f32 %v1395_v47, %v1321_v27  ;;  %v1460_v27 = vld [vmem:[#allocation10 + $0xd0] sm:$0xff]  ;;  %v1461_v8 = vld [vmem:[#allocation10 + $0xd8] sm:$0xff]  ;;  %v1254_v47 = vld [vmem:[#allocation2 + $0xa0] sm:$0xff] }
 0x3a5   : > { %v1693_v58 = vmul.f32 %v1642_v48, %v2976_v38  ;;  %v1797_v26 = vmul.f32 %v2978_v39, %v1642_v48  ;;  %v1902_v37 = vmul.f32 %v2985_v13, %v1642_v48  ;;  %v3019_v61 = vmul.f32 %v1521_v53, %v1521_v53  ;;  %v1652_v29 = vpop.permute.xlu0 %1651 }
 0x3a6   : > { %v3021_v63 = vmul.f32 %v1552_v1, %v1552_v1  ;;  %v3023_v12 = vmul.f32 %v1553_v25, %v1553_v25  ;;  %v1490_v41 = vsub.f32 %v1362_v42, %v1458_v43  ;;  %v1491_v6 = vsub.f32 %v1363_v49, %v1459_v31 }
 0x3a7   : > { %v1724_v54 = vadd.f32 %v1723_v46, %v1693_v58  ;;  %v1828_v21 = vadd.f32 %v1827_v60, %v1797_v26  ;;  %v1933_v4 = vadd.f32 %v1932_v62, %v1902_v37  ;;  %v1522_v38 = vsub.f32 %v1426_v55, %v1458_v43 }
 0x3a8   : > { %v1554_v14 = vsub.f32 %v1362_v42, %v1426_v55  ;;  %v1798_v39 = vmul.f32 %v2983_v10, %v1642_v48  ;;  %v1903_v13 = vmul.f32 %v2987_v24, %v1642_v48  ;;  %v1523_v9 = vsub.f32 %v1427_v57, %v1459_v31  ;;  %v1331_v42 = vpop.permute.xlu1 %1330 }
 0x3a9   : > { %v1364_v40 = vmul.f32 %v1326_v45, %v1252_v59  ;;  %v1365_v19 = vmul.f32 %v1326_v45, %v1253_v5  ;;  %v1694_v0 = vmul.f32 %v1647_v28, %v2992_v15  ;;  %v1555_v34 = vsub.f32 %v1363_v49, %v1427_v57  ;;  %v1255_v49 = vld [vmem:[#allocation2 + $0xf8] sm:$0xff]  ;;  %v3044_v37 = vpop.permute.xlu0 %1656 }
 0x3aa   : > { %v1829_v52 = vadd.f32 %v1828_v21, %v1798_v39  ;;  %v1934_v20 = vadd.f32 %v1933_v4, %v1903_v13  ;;  %v1428_v2 = vmul.f32 %v1396_v11, %v1326_v45  ;;  %v3028_v30 = vmul.f32 %v1490_v41, %v1490_v41  ;;  %v1400_v39 = vld [vmem:[#allocation3 + $0x28] sm:$0xff] }
 0x3ab   : > { %v3030_v32 = vmul.f32 %v1491_v6, %v1491_v6  ;;  %v1429_v10 = vmul.f32 %v1397_v56, %v1326_v45  ;;  %v1725_v1 = vadd.f32 %v1724_v54, %v1694_v0  ;;  %v1771_v24 = vmul.f32 %v1522_v38, %v1522_v38  ;;  %v1399_v45 = vld [vmem:[#allocation3] sm:$0xff]  ;;  %v1401_v0 = vld [vmem:[#allocation3 + $0x98] sm:$0xff] }
 0x3ac   : > { %v1695_v48 = vmul.f32 %v1647_v28, %v2994_v16  ;;  %v1799_v3 = vmul.f32 %v2996_v18, %v1647_v28  ;;  %v1904_v15 = vmul.f32 %v3003_v22, %v1647_v28  ;;  %v3035_v35 = vmul.f32 %v1523_v9, %v1523_v9  ;;  %v1398_v22 = vld [vmem:[#allocation3 + $0xb8] sm:$0xff]  ;;  %v1462_v6 = vld [vmem:[#allocation10 + $0xe0] sm:$0xff]  ;;  %v1336_v13 = vpop.permute.xlu1 %1335 }
 0x3ad   : > { %v3037_v36 = vmul.f32 %v1554_v14, %v1554_v14  ;;  %v1492_v53 = vsub.f32 %v1364_v40, %v1460_v27  ;;  %v1493_v25 = vsub.f32 %v1365_v19, %v1461_v8  ;;  %v1524_v23 = vsub.f32 %v1428_v2, %v1460_v27 }
 0x3ae   : > { %v1726_v60 = vadd.f32 %v1725_v1, %v1695_v48  ;;  %v1830_v62 = vadd.f32 %v1829_v52, %v1799_v3  ;;  %v1935_v43 = vadd.f32 %v1934_v20, %v1904_v15  ;;  %v1525_v31 = vsub.f32 %v1429_v10, %v1461_v8  ;;  %v1662_v1 = vpop.permute.xlu0 %1661  ;;  %v1256_v3 = vld [vmem:[#allocation2 + $0x20] sm:$0xff]  ;;  %v1464_v15 = vld [vmem:[#allocation10 + $0xf0] sm:$0xff] }
 0x3af   : > { %v1556_v55 = vsub.f32 %v1364_v40, %v1428_v2  ;;  %v1800_v16 = vmul.f32 %v3001_v17, %v1647_v28  ;;  %v1905_v18 = vmul.f32 %v3005_v33, %v1647_v28  ;;  %v3041_v46 = vmul.f32 %v1555_v34, %v1555_v34  ;;  %v1463_v33 = vld [vmem:[#allocation10 + $0xe8] sm:$0xff] }
 0x3b0   : > { %v1557_v57 = vsub.f32 %v1365_v19, %v1429_v10  ;;  %v1366_v58 = vmul.f32 %v1331_v42, %v1254_v47  ;;  %v1696_v26 = vmul.f32 %v1652_v29, %v3010_v44  ;;  %v3046_v41 = vmul.f32 %v1492_v53, %v1492_v53 }
 0x3b1   : > { %v1831_v59 = vadd.f32 %v1830_v62, %v1800_v16  ;;  %v1936_v5 = vadd.f32 %v1935_v43, %v1905_v18  ;;  %v1367_v54 = vmul.f32 %v1331_v42, %v1255_v49  ;;  %v3048_v21 = vmul.f32 %v1493_v25, %v1493_v25  ;;  %v1257_v43 = vld [vmem:[#allocation2 + $0x98] sm:$0xff] }
 0x3b2   : > { %v1773_v17 = vmul.f32 %v1524_v23, %v1524_v23  ;;  %v1430_v28 = vmul.f32 %v1398_v22, %v1331_v42  ;;  %v1727_v4 = vadd.f32 %v1726_v60, %v1696_v26  ;;  %v1774_v11 = vmul.f32 %v1525_v31, %v1525_v31  ;;  %v1465_v23 = vld [vmem:[#allocation10 + $0xf8] sm:$0xff] }
 0x3b3   : > { %v3050_v38 = vmul.f32 %v1556_v55, %v1556_v55  ;;  %v1801_v44 = vmul.f32 %v3014_v51, %v1652_v29  ;;  %v1906_v14 = vmul.f32 %v3021_v63, %v1652_v29  ;;  %v3054_v56 = vmul.f32 %v1557_v57, %v1557_v57 }
 0x3b4   : > { %v1431_v9 = vmul.f32 %v1399_v45, %v1331_v42  ;;  %v1494_v40 = vsub.f32 %v1366_v58, %v1462_v6  ;;  %v1697_v19 = vmul.f32 %v1652_v29, %v3012_v50  ;;  %v1495_v34 = vsub.f32 %v1367_v54, %v1463_v33 }
 0x3b5   : > { %v1802_v52 = vmul.f32 %v3019_v61, %v1652_v29  ;;  %v1832_v20 = vadd.f32 %v1831_v59, %v1801_v44  ;;  %v1937_v27 = vadd.f32 %v1936_v5, %v1906_v14  ;;  %v1526_v8 = vsub.f32 %v1430_v28, %v1462_v6  ;;  %v1667_v5 = vpop.permute.xlu0 %1666 }
 0x3b6   : > { %v1558_v2 = vsub.f32 %v1366_v58, %v1430_v28  ;;  %v1728_v10 = vadd.f32 %v1727_v4, %v1697_v19  ;;  %v1432_v51 = vmul.f32 %v1400_v39, %v1336_v13  ;;  %v1907_v48 = vmul.f32 %v3023_v12, %v1652_v29  ;;  %v1672_v19 = vpop.permute.xlu1 %1671 }
 0x3b7   : > { %v1833_v63 = vadd.f32 %v1832_v20, %v1802_v52  ;;  %v1433_v53 = vmul.f32 %v1401_v0, %v1336_v13  ;;  %v1803_v25 = vmul.f32 %v1771_v24, %v3044_v37  ;;  %v1527_v50 = vsub.f32 %v1431_v9, %v1463_v33 }
 0x3b8   : > { %v1559_v47 = vsub.f32 %v1367_v54, %v1431_v9  ;;  %v1590_v42 = vmul.f32 %v1494_v40, %v1494_v40  ;;  %v1698_v61 = vmul.f32 %v3044_v37, %v3028_v30  ;;  %v1591_v60 = vmul.f32 %v1495_v34, %v1495_v34 }
 0x3b9   : > { %v1938_v62 = vadd.f32 %v1937_v27, %v1907_v48  ;;  %v1804_v49 = vmul.f32 %v3035_v35, %v3044_v37  ;;  %v1834_v31 = vadd.f32 %v1833_v63, %v1803_v25  ;;  %v1775_v12 = vmul.f32 %v1526_v8, %v1526_v8 }
 0x3ba   : > { %v1368_v29 = vmul.f32 %v1336_v13, %v1256_v3  ;;  %v1528_v55 = vsub.f32 %v1432_v51, %v1464_v15  ;;  %v1729_v16 = vadd.f32 %v1728_v10, %v1698_v61  ;;  %v1908_v24 = vmul.f32 %v3037_v36, %v3044_v37 }
 0x3bb   : > { %v1805_v18 = vmul.f32 %v1773_v17, %v1662_v1  ;;  %v1529_v22 = vsub.f32 %v1433_v53, %v1465_v23  ;;  %v1835_v57 = vadd.f32 %v1834_v31, %v1804_v49  ;;  %v1776_v58 = vmul.f32 %v1527_v50, %v1527_v50 }
 0x3bc   : > { %v1880_v30 = vmul.f32 %v1558_v2, %v1558_v2  ;;  %v1369_v26 = vmul.f32 %v1336_v13, %v1257_v43  ;;  %v1699_v59 = vmul.f32 %v3044_v37, %v3030_v32  ;;  %v1881_v45 = vmul.f32 %v1559_v47, %v1559_v47 }
 0x3bd   : > { %v1939_v35 = vadd.f32 %v1938_v62, %v1908_v24  ;;  %v1806_v6 = vmul.f32 %v1774_v11, %v1662_v1  ;;  %v1836_v54 = vadd.f32 %v1835_v57, %v1805_v18  ;;  %v1496_v33 = vsub.f32 %v1368_v29, %v1464_v15 }
 0x3be   : > { %v1700_v28 = vmul.f32 %v1662_v1, %v3046_v41  ;;  %v1777_v4 = vmul.f32 %v1528_v55, %v1528_v55  ;;  %v1730_v44 = vadd.f32 %v1729_v16, %v1699_v59  ;;  %v1909_v36 = vmul.f32 %v3041_v46, %v3044_v37 }
 0x3bf   : > { %v1778_v17 = vmul.f32 %v1529_v22, %v1529_v22  ;;  %v1807_v14 = vmul.f32 %v1775_v12, %v1667_v5  ;;  %v1837_v39 = vadd.f32 %v1836_v54, %v1806_v6  ;;  %v1560_v13 = vsub.f32 %v1368_v29, %v1432_v51 }
 0x3c0   : > { %v1497_v9 = vsub.f32 %v1369_v26, %v1465_v23  ;;  %v1701_v32 = vmul.f32 %v1662_v1, %v3048_v21  ;;  %v1731_v40 = vadd.f32 %v1730_v44, %v1700_v28  ;;  %v1910_v11 = vmul.f32 %v3050_v38, %v1662_v1 }
 0x3c1   : > { %v1808_v0 = vmul.f32 %v1776_v58, %v1667_v5  ;;  %v1838_v34 = vadd.f32 %v1837_v39, %v1807_v14  ;;  %v1940_v52 = vadd.f32 %v1939_v35, %v1909_v36  ;;  %v1809_v41 = vmul.f32 %v1777_v4, %v1672_v19 }
 0x3c2   : > { %v1592_v20 = vmul.f32 %v1496_v33, %v1496_v33  ;;  %v1702_v27 = vmul.f32 %v1667_v5, %v1590_v42  ;;  %v1732_v8 = vadd.f32 %v1731_v40, %v1701_v32  ;;  %v1810_v2 = vmul.f32 %v1778_v17, %v1672_v19 }
 0x3c3   : > { %v1839_v46 = vadd.f32 %v1838_v34, %v1808_v0  ;;  %v1911_v37 = vmul.f32 %v3054_v56, %v1662_v1  ;;  %v1941_v10 = vadd.f32 %v1940_v52, %v1910_v11  ;;  %v1593_v51 = vmul.f32 %v1497_v9, %v1497_v9 }
 0x3c4   : > { %v1703_v63 = vmul.f32 %v1667_v5, %v1591_v60  ;;  %v1733_v48 = vadd.f32 %v1732_v8, %v1702_v27  ;;  %v1561_v21 = vsub.f32 %v1369_v26, %v1433_v53  ;;  %v1882_v15 = vmul.f32 %v1560_v13, %v1560_v13 }
 0x3c5   : > { %v1840_v3 = vadd.f32 %v1839_v46, %v1809_v41  ;;  %v1912_v25 = vmul.f32 %v1880_v30, %v1667_v5  ;;  %v1942_v38 = vadd.f32 %v1941_v10, %v1911_v37  ;;  %v1704_v50 = vmul.f32 %v1672_v19, %v1592_v20 }
 0x3c6   : > { %v1734_v47 = vadd.f32 %v1733_v48, %v1703_v63  ;;  %v1913_v23 = vmul.f32 %v1881_v45, %v1667_v5  ;;  %v1705_v42 = vmul.f32 %v1672_v19, %v1593_v51  ;;  %v1883_v49 = vmul.f32 %v1561_v21, %v1561_v21 }
 0x3c7   : > { %v1841_v61 = vadd.f32 %v1840_v3, %v1810_v2  ;;  %v1943_v62 = vadd.f32 %v1942_v38, %v1912_v25  ;;  %v1914_v31 = vmul.f32 %v1882_v15, %v1672_v19 }
 0x3c8   : > { %v1735_v43 = vadd.f32 %v1734_v47, %v1704_v50  ;;  %v1915_v60 = vmul.f32 %v1883_v49, %v1672_v19 }
 0x3c9   : > { %1842 = vadd.xlane.f32.xlu1 %v1841_v61  ;;  %v1944_v56 = vadd.f32 %v1943_v62, %v1913_v23 }
 0x3ca   : > { %v1736_v1 = vadd.f32 %v1735_v43, %v1705_v42 }
 0x3cb   : > { %v1945_v12 = vadd.f32 %v1944_v56, %v1914_v31 }
 0x3cc   : > { %1737 = vadd.xlane.f32.xlu0 %v1736_v1 }
 0x3cd   : > { %v1946_v53 = vadd.f32 %v1945_v12, %v1915_v60 }
 0x3d0   : > { %1947 = vadd.xlane.f32.xlu0 %v1946_v53 }
 0x452   : > { %v1843_v29 = vpop.xlane.xlu1 %1842 }
 0x453   : > { %v1844_v55 = vrot.slane %v1843_v29, 4 }
 0x455   : > { %v1845_v16 = vadd.f32 %v1844_v55, %v1843_v29  ;;  %v1738_v24 = vpop.xlane.xlu0 %1737 }
 0x456   : > { %v1739_v18 = vrot.slane %v1738_v24, 4 }
 0x457   : > { %v1846_v22 = vrot.slane %v1845_v16, 2 }
 0x458   : > { %v1740_v57 = vadd.f32 %v1739_v18, %v1738_v24 }
 0x459   : > { %v1847_v58 = vadd.f32 %v1846_v22, %v1845_v16  ;;  %v1948_v30 = vpop.xlane.xlu0 %1947 }
 0x45a   : > { %v1741_v26 = vrot.slane %v1740_v57, 2  ;;  %v1949_v59 = vrot.slane %v1948_v30, 4 }
 0x45b   : > { %v1848_v5 = vrot.slane %v1847_v58, 1 }
 0x45c   : > { %v1950_v45 = vadd.f32 %v1949_v59, %v1948_v30  ;;  %v1742_v35 = vadd.f32 %v1741_v26, %v1740_v57 }
 0x45d   : > { %v1849_v33 = vadd.f32 %v1848_v5, %v1847_v58 }
 0x45e   : > { %v1951_v6 = vrot.slane %v1950_v45, 2  ;;  %v1743_v54 = vrot.slane %v1742_v35, 1 }
 0x460   : > { %v1952_v28 = vadd.f32 %v1951_v6, %v1950_v45  ;;  %v1744_v4 = vadd.f32 %v1743_v54, %v1742_v35 }
 0x462   : > { %2185 = vpush %v1744_v4  ;;  %v1953_v44 = vrot.slane %v1952_v28, 1 }
 0x463   : > { %2187 = vpush %v1849_v33 }
 0x464   : > { %v1954_v36 = vadd.f32 %v1953_v44, %v1952_v28 }
 0x466   : > { %2189 = vpush %v1954_v36 }
 0x493   : > { %s2186_s20 = spop %2185 }
 0x494   : > { %s2188_s11 = spop %2187  ;;  %s1746_s12 = smul.f32 0.00024414063, %s2186_s20 }
 0x495   : > { %s1851_s8 = smul.f32 0.00024414063, %s2188_s11 }
 0x496   : > { %v1964_v13 = vstv %s1746_s12 }
 0x497   : > { %s2190_s10 = spop %2189  ;;  %v1962_v14 = vstv %s1851_s8 }
 0x498   : > { %s1956_s18 = smul.f32 0.00024414063, %s2190_s10 }
 0x49a   : > { %v1960_v17 = vstv %s1956_s18 }
 0x49b   : > { %v1961_v39 = vsel %vm1959_vm4, %v1960_v17, 0.0 }
 0x49c   : > { %v1963_v9 = vsel %vm1958_vm5, %v1962_v14, %v1961_v39 }
 0x49d   : > { %v1965_v32 = vsel %vm1957_vm6, %v1964_v13, %v1963_v9 }
 0x49e   : > { %1966 = vst [vmem:[#allocation11] sm:$0x1] %v1965_v32 }
 0x49f PF: > { %p2217_p11 = scmp.eq.s32.totalorder %s2504_s19, 1  ;;  %s2459_s9 = smov [#allocation11]  }
 0x4a0   : > { %s1974_s13 = sshll.u32 %s2459_s9, 4  ;;  %s1975_s13 = int_to_ptr.vmem [resolvable:$true] %s1974_s13 }
 0x4a1   : > { %s2377_s15 = scalar_lea.vmem %s1975_s13, 16  ;;  %s2383_s27 = scalar_lea.vmem %s1975_s13, 32 }
 0x4a2   : > { %p2378_p12 = scmp.ne.s32.totalorder %s1975_s13, %s2377_s15  ;;  %p2384_p7 = scmp.lt.s32.totalorder %s1975_s13, %s1975_s13 }
 0x4a3   : > { %p2385_p1 = scmp.lt.s32.totalorder %s2383_s27, %s2377_s15 }
 0x4a4   : > { %p2379_p13 = pnand %p2378_p12, %p2217_p11 }
 0x4a5   : > { %p2386_p4 = por %p2385_p1, %p2384_p7 }
 0x4a6   : > { %p2380_p2 = pneg %p2379_p13 }
 0x4a8   : > { %p2387_p5 = pnand %p2386_p4, %p2380_p2 }
 0x4aa   : > { %2390 = shalt.err (!%p2387_p5)
}
 0x4ab   : > { %2200 = dma.vmem_to_hbm [thread:$0]  (%p2217_p11), %s1975_s13, 16, %s3106_s4, [#allocation7]  }
 0x4ac   : > { %2430 = dma.done.wait (%p2217_p11), [#allocation7], 16  }
 0x4ad   : > { %2432 = vsyncadd (%p2217_p11), [#allocation7], 4294967280 }
 0x4ae PF: > { %p18_p0 = scmp.ge.s32.totalorder %s2530_s25, 4   ;;  %s3119_s15 = smov %s2439_s16 }
 0x4af   : > { %s3120_s16 = smov %s2443_s17  ;;  %s3121_s17 = smov %s2547_s7 }
 0x4b0   : > { %s3122_s18 = smov %s2530_s25  ;;  %20 = sbr.rel (!%p18_p0) target bundleno = 6 (0x6), region = 101 }
 0x4b5   :  { %1987 = vsyncpa [#allocation6], 1 }
 0x4b6   :  { %1989 = vsyncpa [#allocation6 + $0x1], 1 }
 0x4b7   :  { %1990 = vsyncpa [#allocation9], 1 }
 0x4b8   :  { %1992 = vsyncpa [#allocation9 + $0x1], 1 }
 0x4b9   :  { %1993 = vsyncpa [#allocation7], 1 }
 0x4ba   :  { %1995 = vsyncpa [#allocation7 + $0x1], 1 }

</bundles_post_ra>
